<compile_context>
chip_gen: v6e
topology: v6e:2x2x1
jax: 0.10.0
libtpu: 0.0.40
codegen_flags: <defaults>
</compile_context>

<pallas_src>
import numpy as np
import jax
import jax.numpy as jnp
from jax import lax
from jax.experimental import pallas as pl
from jax.experimental.pallas import tpu as pltpu

EPS = float(np.finfo(float).eps)   # float64 eps, exactly as in the PyTorch code


def _build_kernel(H, W, F_t, F_n, kH, kW, num_rfs):
    Hp, Wp = H - kH + 1, W - kW + 1          # y_max, x_max in the PyTorch code
    NF = F_t + F_n
    corr_x = num_rfs * kH                    # crops the W axis (filts_temp.shape[3])
    corr_y = num_rfs * kW                    # crops the H axis (filts_temp.shape[4])
    Hc, Wc = Hp - 2 * corr_y, Wp - 2 * corr_x
    OY, OX = 2 * corr_y + 1, 2 * corr_x + 1
    NFLAT = H * W                            # full-stride flat length (256 @ 16x16)
    Kp = Hc * W                              # full-stride contraction length (128 @ 16x16)
    NB = OY * OX * NF                        # valid rows of the window matrix B
    NB_pad = ((NB + 255) // 256) * 256       # pad matmul N dim to a 256 multiple
    KT = kH * kW
    KT_pad = ((KT + 7) // 8) * 8             # pad tap axis to a sublane multiple
    margin = (kH - 1) * W + (kW - 1)         # largest im2col lane shift
    PADW = NFLAT + ((margin + 127) // 128) * 128

    assert Hc >= 1 and Wc >= 1, "correlation window does not fit"
    # every correlation window slice must stay inside the (NF, H*W) maps
    assert (OY - 1) * W + (OX - 1) + Kp <= NFLAT

    # NOTE: faithful to the PyTorch code, which uses corr_y TWICE here (quirk of
    # the reference). Do not "fix" without changing the reference as well.
    inv_norm = 1.0 / float((Hp - 2 * corr_y) * (Wp - 2 * corr_y))

    def kernel(x_ref, w_ref, cs_ref, x1_ref, x2_ref, b_ref):
        # x_ref : (1, PADW)     f32 VMEM  flattened, zero-padded input image
        # w_ref : (NF, KT_pad)  f32 VMEM  stacked conv weights (depth-sum & /2 folded)
        # cs_ref: (1, Kp)       f32 VMEM  crop scale: inv_norm where (k % W) < Wc, else 0
        # x1_ref: (NF, NFLAT)   f32 VMEM  normalized maps, full-stride flat, lane-dense
        # x2_ref: (NF, NB_pad)  f32 VMEM  correlations, lane-dense: [i, (dy,dx,j)]
        # b_ref : (NB_pad, Kp)  f32 VMEM  scratch: window matrix B (full-vreg rows)

        xrow = x_ref[...]                                        # (1, PADW)

        # --- im2col on the full-stride grid: KT lane-shifted copies of the image.
        shifts = [xrow[:, u * W + v: u * W + v + NFLAT]
                  for u in range(kH) for v in range(kW)]
        if KT_pad > KT:
            shifts.append(jnp.zeros((KT_pad - KT, NFLAT), jnp.float32))
        P = jnp.concatenate(shifts, axis=0)                      # (KT_pad, NFLAT)

        # --- conv for all NF filters in one shot on the MXU.
        # Split both operands into bf16 hi/lo; three passes give ~f32 accuracy
        # independent of the default MXU precision for f32 operands.
        wmat = w_ref[...]
        w_hi = wmat.astype(jnp.bfloat16).astype(jnp.float32)
        w_lo = wmat - w_hi
        p_hi = P.astype(jnp.bfloat16).astype(jnp.float32)
        p_lo = P - p_hi
        dn_c = (((1,), (0,)), ((), ()))
        mm = lambda a, b: lax.dot_general(a, b, dn_c,
                                          preferred_element_type=jnp.float32)
        conv = mm(w_hi, p_hi) + mm(w_lo, p_hi) + mm(w_hi, p_lo)  # (NF, NFLAT)
        rows = jnp.maximum(conv, 0.0)

        # --- channel normalization: sublane reduce + EUP reciprocal (+1 Newton step).
        denom = jnp.sum(rows, axis=0, keepdims=True) + jnp.float32(EPS)   # (1, NFLAT)
        r = pl.reciprocal(denom, approx=True)
        inv = r * (2.0 - denom * r)                              # Newton refinement
        maps = rows * inv                                        # (NF, NFLAT), 2 vregs

        # --- x1: single lane-dense store (wrapper crops to (Hp, Wp)).
        x1_ref[...] = maps

        # --- window matrix B: row (dy*OX + dx)*NF + j  ==  maps[j, dy*W+dx : +Kp].
        # Each block is one full (NF=8, Kp) unmasked vreg slab; only `maps`
        # (2 vregs) stays live across the unrolled loop, so register pressure is low.
        if NB_pad > NB:
            b_ref[NB:NB_pad, :] = jnp.zeros((NB_pad - NB, Kp), jnp.float32)
        for dy in range(OY):
            for dx in range(OX):
                base = (dy * OX + dx) * NF
                off = dy * W + dx
                b_ref[base:base + NF, :] = maps[:, off:off + Kp]

        # --- crop operand: centre window with 1/norm and the col<Wc mask folded in.
        cbase = corr_y * W + corr_x
        crop = maps[:, cbase:cbase + Kp] * cs_ref[...]           # (NF, Kp)

        # --- correlation: one MXU matmul (NF,Kp) x (NB_pad,Kp)^T -> (NF, NB_pad).
        # Split only the tiny crop operand; B terms are non-negative, so any
        # residual RHS truncation stays well inside the test tolerance.
        c_hi = crop.astype(jnp.bfloat16).astype(jnp.float32)
        c_lo = crop - c_hi
        bmat = b_ref[...]
        dn_x = (((1,), (1,)), ((), ()))
        x2_ref[...] = (
            lax.dot_general(c_hi, bmat, dn_x, preferred_element_type=jnp.float32)
            + lax.dot_general(c_lo, bmat, dn_x, preferred_element_type=jnp.float32))

    meta = dict(Hp=Hp, Wp=Wp, NF=NF, OY=OY, OX=OX, Hc=Hc, Wc=Wc,
                NFLAT=NFLAT, Kp=Kp, NB=NB, NB_pad=NB_pad,
                KT=KT, KT_pad=KT_pad, PADW=PADW, inv_norm=inv_norm)
    return kernel, meta


def net_forward(x, filts_temp, filts_notemp, num_rfs):
    """Pallas equivalent of Net.forward. Returns (x1, x2) with PyTorch shapes."""
    x2d = jnp.squeeze(x).astype(jnp.float32)
    H, W = x2d.shape
    F_t, _, kD, kH, kW = filts_temp.shape
    F_n, _, kDn, kHn, kWn = filts_notemp.shape
    assert kD == 2 and kDn == 1 and kHn == kH and kWn == kW, \
        "filter shapes must be compatible, as Net.forward implicitly requires"

    kernel, m = _build_kernel(H, W, F_t, F_n, kH, kW, num_rfs)
    NF, NFLAT, Kp = m["NF"], m["NFLAT"], m["Kp"]
    NB, NB_pad, KT, KT_pad, PADW = m["NB"], m["NB_pad"], m["KT"], m["KT_pad"], m["PADW"]
    Hp, Wp, OY, OX, Wc = m["Hp"], m["Wp"], m["OY"], m["OX"], m["Wc"]

    # Both depth slices of the expanded 'video' are the same frame, so the depth
    # taps collapse into one 2-D filter; the /2 of the temporal branch is folded
    # into the weights (relu(a/2) == relu of the halved-weight conv).
    wt_flat = (jnp.sum(filts_temp.astype(jnp.float32), axis=2)
               .reshape(F_t, KT) * jnp.float32(0.5))
    wn_flat = filts_notemp.astype(jnp.float32).reshape(F_n, KT)
    wmat = jnp.pad(jnp.concatenate([wt_flat, wn_flat], axis=0),
                   ((0, 0), (0, KT_pad - KT)))                    # (NF, KT_pad)

    # Flattened, zero-padded image (lane headroom for the im2col shifts).
    x_flat = jnp.pad(x2d.reshape(1, NFLAT), ((0, 0), (0, PADW - NFLAT)))

    # Crop scale vector: 1/norm on valid window columns, 0 on the stride padding.
    k_idx = np.arange(Kp)
    cs = jnp.asarray(np.where((k_idx % W) < Wc, m["inv_norm"], 0.0)
                     .astype(np.float32).reshape(1, Kp))

    # NOTE: single invocation, no grid -- the whole problem fits in VMEM.  If this
    # op were called per-frame, frames should be batched with a leading 'parallel'
    # grid axis to use both v7x TensorCores and amortize launch overhead.
    x1_k, x2_k = pl.pallas_call(
        kernel,
        out_shape=(jax.ShapeDtypeStruct((NF, NFLAT), jnp.float32),
                   jax.ShapeDtypeStruct((NF, NB_pad), jnp.float32)),
        in_specs=[pl.BlockSpec(memory_space=pltpu.MemorySpace.VMEM)] * 3,
        out_specs=(pl.BlockSpec(memory_space=pltpu.MemorySpace.VMEM),
                   pl.BlockSpec(memory_space=pltpu.MemorySpace.VMEM)),
        # B scratch is OY*OX*NF*Hc*W*4 bytes (256 KiB here).  For inputs beyond
        # ~160x160 it should be tiled over K (grid axis marked 'arbitrary').
        scratch_shapes=[pltpu.VMEM((NB_pad, Kp), jnp.float32)],
    )(x_flat, wmat, cs)

    # Wrapper-side layout plumbing (free): crop the full-stride maps and reorder
    # the correlation lanes back to the PyTorch shapes.
    x1 = x1_k.reshape(NF, H, W)[:, :Hp, :Wp].reshape(1, 1, NF, Hp, Wp)
    x2 = jnp.transpose(x2_k[:, :NB].reshape(NF, OY, OX, NF),
                       (0, 3, 1, 2)).reshape(1, NF, NF, OY, OX)
    return x1, x2


def net_forward_ref(x, filts_temp, filts_notemp, num_rfs):
    """Pure-JAX reference (mirrors the PyTorch forward)."""
    ft = filts_temp.astype(jnp.float32)
    fn = filts_notemp.astype(jnp.float32)
    corr_x = num_rfs * ft.shape[3]
    corr_y = num_rfs * ft.shape[4]
    NF = ft.shape[0] + fn.shape[0]
    xs = jnp.squeeze(x)
    x5 = jnp.broadcast_to(xs, (2,) + xs.shape).reshape(
        1, 1, 2, xs.shape[0], xs.shape[1]).astype(jnp.float32)
    dn = ('NCDHW', 'OIDHW', 'NCDHW')
    conv = lambda a, w: lax.conv_general_dilated(
        a, w, (1, 1, 1), 'VALID', dimension_numbers=dn,
        precision=lax.Precision.HIGHEST)
    x_temp = jax.nn.relu(conv(x5, ft) / 2)
    x_notemp = jax.nn.relu(conv(x5[:, :, -1:, :, :], fn))
    xc = jnp.concatenate([x_temp, x_notemp], axis=1)
    x1 = xc / (jnp.sum(xc, axis=1, keepdims=True) + EPS)
    y_max, x_max = x1.shape[3], x1.shape[4]
    x1f = x1[:, :, :, corr_y:y_max - corr_y, corr_x:x_max - corr_x].reshape(
        NF, 1, 1, y_max - 2 * corr_y, x_max - 2 * corr_x)
    x1v = x1.reshape(1, 1, NF, y_max, x_max)
    x2 = conv(x1v, x1f)
    x2 = x2.reshape(1, NF, NF, 2 * corr_y + 1, 2 * corr_x + 1)
    x2 = x2 / ((y_max - 2 * corr_y) * (x_max - 2 * corr_y))
    return x1v, x2


if __name__ == "__main__":
    key = jax.random.PRNGKey(0)
    k1, k2, k3 = jax.random.split(key, 3)

    # Deterministic synthetic parameters (shapes as implied by Net.__init__ after permute):
    #   filts_temp  : (F_t, 1, 2, kH, kW)   filts_notemp: (F_n, 1, 1, kH, kW)
    F_t, F_n, kD, kH, kW, num_rfs = 4, 4, 2, 3, 3, 1
    filts_temp = jax.random.normal(k1, (F_t, 1, kD, kH, kW), jnp.float32)
    filts_notemp = jax.random.normal(k2, (F_n, 1, 1, kH, kW), jnp.float32)
    x = jax.random.normal(k3, (1, 1, 16, 16), jnp.float32)   # squeezes to a (16,16) image

    x1, x2 = net_forward(x, filts_temp, filts_notemp, num_rfs)
    jax.block_until_ready((x1, x2))

    NF = F_t + F_n
    assert x1.shape == (1, 1, NF, 14, 14), x1.shape
    assert x2.shape == (1, NF, NF, 7, 7), x2.shape

    x1_r, x2_r = net_forward_ref(x, filts_temp, filts_notemp, num_rfs)
    np.testing.assert_allclose(np.asarray(x1), np.asarray(x1_r), rtol=5e-3, atol=1e-5)
    np.testing.assert_allclose(np.asarray(x2), np.asarray(x2_r), rtol=5e-3, atol=1e-5)

    print("KERNEL_OK")
</pallas_src>

<mosaic_0001>
module attributes {stable_mosaic.version = 11 : i64} {
  func.func @kernel(%arg0: memref<1x384xf32, #tpu.memory_space<vmem>>, %arg1: memref<8x16xf32, #tpu.memory_space<vmem>>, %arg2: memref<1x128xf32, #tpu.memory_space<vmem>>, %arg3: memref<8x256xf32, #tpu.memory_space<vmem>>, %arg4: memref<8x512xf32, #tpu.memory_space<vmem>>, %arg5: memref<512x128xf32, #tpu.memory_space<vmem>>) attributes {dimension_semantics = [], scalar_prefetch = 0 : i64, scratch_operands = 1 : i64, tpu.core_type = #tpu.core_type<tc>} {
    %c0 = arith.constant 0 : index
    %c0_0 = arith.constant 0 : index
    %0 = vector.load %arg0[%c0, %c0_0] : memref<1x384xf32, #tpu.memory_space<vmem>>, vector<1x384xf32>
    %1 = vector.extract_strided_slice %0 {offsets = [0, 0], sizes = [1, 256], strides = [1, 1]} : vector<1x384xf32> to vector<1x256xf32>
    %2 = vector.extract_strided_slice %0 {offsets = [0, 1], sizes = [1, 256], strides = [1, 1]} : vector<1x384xf32> to vector<1x256xf32>
    %3 = vector.extract_strided_slice %0 {offsets = [0, 2], sizes = [1, 256], strides = [1, 1]} : vector<1x384xf32> to vector<1x256xf32>
    %4 = vector.extract_strided_slice %0 {offsets = [0, 16], sizes = [1, 256], strides = [1, 1]} : vector<1x384xf32> to vector<1x256xf32>
    %5 = vector.extract_strided_slice %0 {offsets = [0, 17], sizes = [1, 256], strides = [1, 1]} : vector<1x384xf32> to vector<1x256xf32>
    %6 = vector.extract_strided_slice %0 {offsets = [0, 18], sizes = [1, 256], strides = [1, 1]} : vector<1x384xf32> to vector<1x256xf32>
    %7 = vector.extract_strided_slice %0 {offsets = [0, 32], sizes = [1, 256], strides = [1, 1]} : vector<1x384xf32> to vector<1x256xf32>
    %8 = vector.extract_strided_slice %0 {offsets = [0, 33], sizes = [1, 256], strides = [1, 1]} : vector<1x384xf32> to vector<1x256xf32>
    %9 = vector.extract_strided_slice %0 {offsets = [0, 34], sizes = [1, 256], strides = [1, 1]} : vector<1x384xf32> to vector<1x256xf32>
    %cst = arith.constant 0.000000e+00 : f32
    %10 = vector.broadcast %cst : f32 to vector<7x256xf32>
    %11 = tpu.concatenate %1, %2, %3, %4, %5, %6, %7, %8, %9, %10 in 0 : vector<1x256xf32>, vector<1x256xf32>, vector<1x256xf32>, vector<1x256xf32>, vector<1x256xf32>, vector<1x256xf32>, vector<1x256xf32>, vector<1x256xf32>, vector<1x256xf32>, vector<7x256xf32> -> vector<16x256xf32>
    %c0_1 = arith.constant 0 : index
    %c0_2 = arith.constant 0 : index
    %12 = vector.load %arg1[%c0_1, %c0_2] : memref<8x16xf32, #tpu.memory_space<vmem>>, vector<8x16xf32>
    %13 = arith.truncf %12 : vector<8x16xf32> to vector<8x16xbf16>
    %14 = arith.extf %13 : vector<8x16xbf16> to vector<8x16xf32>
    %15 = arith.subf %12, %14 : vector<8x16xf32>
    %16 = arith.truncf %11 : vector<16x256xf32> to vector<16x256xbf16>
    %17 = arith.extf %16 : vector<16x256xbf16> to vector<16x256xf32>
    %18 = arith.subf %11, %17 : vector<16x256xf32>
    %cst_3 = arith.constant dense<0.000000e+00> : vector<8x256xf32>
    %19 = tpu.matmul %14, %17, %cst_3 {dimension_numbers = #tpu.dot_dimension_numbers<[1], [0], [0], [1], [0, 0, 1, 1], [], []>} : vector<8x16xf32>, vector<16x256xf32>, vector<8x256xf32> -> vector<8x256xf32>
    %cst_4 = arith.constant dense<0.000000e+00> : vector<8x256xf32>
    %20 = tpu.matmul %15, %17, %cst_4 {dimension_numbers = #tpu.dot_dimension_numbers<[1], [0], [0], [1], [0, 0, 1, 1], [], []>} : vector<8x16xf32>, vector<16x256xf32>, vector<8x256xf32> -> vector<8x256xf32>
    %21 = arith.addf %19, %20 : vector<8x256xf32>
    %cst_5 = arith.constant dense<0.000000e+00> : vector<8x256xf32>
    %22 = tpu.matmul %14, %18, %cst_5 {dimension_numbers = #tpu.dot_dimension_numbers<[1], [0], [0], [1], [0, 0, 1, 1], [], []>} : vector<8x16xf32>, vector<16x256xf32>, vector<8x256xf32> -> vector<8x256xf32>
    %23 = arith.addf %21, %22 : vector<8x256xf32>
    %cst_6 = arith.constant 0.000000e+00 : f32
    %24 = vector.broadcast %cst_6 : f32 to vector<8x256xf32>
    %25 = arith.maximumf %23, %24 : vector<8x256xf32>
    %cst_7 = arith.constant dense<0.000000e+00> : vector<256xf32>
    %26 = vector.multi_reduction <add>, %25, %cst_7 [0] : vector<8x256xf32> to vector<256xf32>
    %27 = vector.shape_cast %26 : vector<256xf32> to vector<1x256xf32>
    %cst_8 = arith.constant 2.22044605E-16 : f32
    %28 = vector.broadcast %cst_8 : f32 to vector<1x256xf32>
    %29 = arith.addf %27, %28 : vector<1x256xf32>
    %30 = tpu.reciprocal %29 {approx = true} : vector<1x256xf32> -> vector<1x256xf32>
    %31 = arith.mulf %29, %30 : vector<1x256xf32>
    %cst_9 = arith.constant 2.000000e+00 : f32
    %32 = vector.broadcast %cst_9 : f32 to vector<1x256xf32>
    %33 = arith.subf %32, %31 : vector<1x256xf32>
    %34 = arith.mulf %30, %33 : vector<1x256xf32>
    %35 = vector.broadcast %34 : vector<1x256xf32> to vector<8x256xf32>
    %36 = arith.mulf %25, %35 : vector<8x256xf32>
    %c0_10 = arith.constant 0 : index
    %c0_11 = arith.constant 0 : index
    %37 = vector.load %arg3[%c0_10, %c0_11] : memref<8x256xf32, #tpu.memory_space<vmem>>, vector<8x256xf32>
    tpu.vector_store %arg3[%c0_10, %c0_11], %36 {strides = array<i32>} : memref<8x256xf32, #tpu.memory_space<vmem>>, vector<8x256xf32>,
    %cst_12 = arith.constant 0.000000e+00 : f32
    %38 = vector.broadcast %cst_12 : f32 to vector<120x128xf32>
    %c392 = arith.constant 392 : index
    %c0_13 = arith.constant 0 : index
    %39 = vector.load %arg5[%c392, %c0_13] : memref<512x128xf32, #tpu.memory_space<vmem>>, vector<120x128xf32>
    tpu.vector_store %arg5[%c392, %c0_13], %38 {strides = array<i32>} : memref<512x128xf32, #tpu.memory_space<vmem>>, vector<120x128xf32>,
    %40 = vector.extract_strided_slice %36 {offsets = [0, 0], sizes = [8, 128], strides = [1, 1]} : vector<8x256xf32> to vector<8x128xf32>
    %c0_14 = arith.constant 0 : index
    %c0_15 = arith.constant 0 : index
    %41 = vector.load %arg5[%c0_14, %c0_15] : memref<512x128xf32, #tpu.memory_space<vmem>>, vector<8x128xf32>
    tpu.vector_store %arg5[%c0_14, %c0_15], %40 {strides = array<i32>} : memref<512x128xf32, #tpu.memory_space<vmem>>, vector<8x128xf32>,
    %42 = vector.extract_strided_slice %36 {offsets = [0, 1], sizes = [8, 128], strides = [1, 1]} : vector<8x256xf32> to vector<8x128xf32>
    %c8 = arith.constant 8 : index
    %c0_16 = arith.constant 0 : index
    %43 = vector.load %arg5[%c8, %c0_16] : memref<512x128xf32, #tpu.memory_space<vmem>>, vector<8x128xf32>
    tpu.vector_store %arg5[%c8, %c0_16], %42 {strides = array<i32>} : memref<512x128xf32, #tpu.memory_space<vmem>>, vector<8x128xf32>,
    %44 = vector.extract_strided_slice %36 {offsets = [0, 2], sizes = [8, 128], strides = [1, 1]} : vector<8x256xf32> to vector<8x128xf32>
    %c16 = arith.constant 16 : index
    %c0_17 = arith.constant 0 : index
    %45 = vector.load %arg5[%c16, %c0_17] : memref<512x128xf32, #tpu.memory_space<vmem>>, vector<8x128xf32>
    tpu.vector_store %arg5[%c16, %c0_17], %44 {strides = array<i32>} : memref<512x128xf32, #tpu.memory_space<vmem>>, vector<8x128xf32>,
    %46 = vector.extract_strided_slice %36 {offsets = [0, 3], sizes = [8, 128], strides = [1, 1]} : vector<8x256xf32> to vector<8x128xf32>
    %c24 = arith.constant 24 : index
    %c0_18 = arith.constant 0 : index
    %47 = vector.load %arg5[%c24, %c0_18] : memref<512x128xf32, #tpu.memory_space<vmem>>, vector<8x128xf32>
    tpu.vector_store %arg5[%c24, %c0_18], %46 {strides = array<i32>} : memref<512x128xf32, #tpu.memory_space<vmem>>, vector<8x128xf32>,
    %48 = vector.extract_strided_slice %36 {offsets = [0, 4], sizes = [8, 128], strides = [1, 1]} : vector<8x256xf32> to vector<8x128xf32>
    %c32 = arith.constant 32 : index
    %c0_19 = arith.constant 0 : index
    %49 = vector.load %arg5[%c32, %c0_19] : memref<512x128xf32, #tpu.memory_space<vmem>>, vector<8x128xf32>
    tpu.vector_store %arg5[%c32, %c0_19], %48 {strides = array<i32>} : memref<512x128xf32, #tpu.memory_space<vmem>>, vector<8x128xf32>,
    %50 = vector.extract_strided_slice %36 {offsets = [0, 5], sizes = [8, 128], strides = [1, 1]} : vector<8x256xf32> to vector<8x128xf32>
    %c40 = arith.constant 40 : index
    %c0_20 = arith.constant 0 : index
    %51 = vector.load %arg5[%c40, %c0_20] : memref<512x128xf32, #tpu.memory_space<vmem>>, vector<8x128xf32>
    tpu.vector_store %arg5[%c40, %c0_20], %50 {strides = array<i32>} : memref<512x128xf32, #tpu.memory_space<vmem>>, vector<8x128xf32>,
    %52 = vector.extract_strided_slice %36 {offsets = [0, 6], sizes = [8, 128], strides = [1, 1]} : vector<8x256xf32> to vector<8x128xf32>
    %c48 = arith.constant 48 : index
    %c0_21 = arith.constant 0 : index
    %53 = vector.load %arg5[%c48, %c0_21] : memref<512x128xf32, #tpu.memory_space<vmem>>, vector<8x128xf32>
    tpu.vector_store %arg5[%c48, %c0_21], %52 {strides = array<i32>} : memref<512x128xf32, #tpu.memory_space<vmem>>, vector<8x128xf32>,
    %54 = vector.extract_strided_slice %36 {offsets = [0, 16], sizes = [8, 128], strides = [1, 1]} : vector<8x256xf32> to vector<8x128xf32>
    %c56 = arith.constant 56 : index
    %c0_22 = arith.constant 0 : index
    %55 = vector.load %arg5[%c56, %c0_22] : memref<512x128xf32, #tpu.memory_space<vmem>>, vector<8x128xf32>
    tpu.vector_store %arg5[%c56, %c0_22], %54 {strides = array<i32>} : memref<512x128xf32, #tpu.memory_space<vmem>>, vector<8x128xf32>,
    %56 = vector.extract_strided_slice %36 {offsets = [0, 17], sizes = [8, 128], strides = [1, 1]} : vector<8x256xf32> to vector<8x128xf32>
    %c64 = arith.constant 64 : index
    %c0_23 = arith.constant 0 : index
    %57 = vector.load %arg5[%c64, %c0_23] : memref<512x128xf32, #tpu.memory_space<vmem>>, vector<8x128xf32>
    tpu.vector_store %arg5[%c64, %c0_23], %56 {strides = array<i32>} : memref<512x128xf32, #tpu.memory_space<vmem>>, vector<8x128xf32>,
    %58 = vector.extract_strided_slice %36 {offsets = [0, 18], sizes = [8, 128], strides = [1, 1]} : vector<8x256xf32> to vector<8x128xf32>
    %c72 = arith.constant 72 : index
    %c0_24 = arith.constant 0 : index
    %59 = vector.load %arg5[%c72, %c0_24] : memref<512x128xf32, #tpu.memory_space<vmem>>, vector<8x128xf32>
    tpu.vector_store %arg5[%c72, %c0_24], %58 {strides = array<i32>} : memref<512x128xf32, #tpu.memory_space<vmem>>, vector<8x128xf32>,
    %60 = vector.extract_strided_slice %36 {offsets = [0, 19], sizes = [8, 128], strides = [1, 1]} : vector<8x256xf32> to vector<8x128xf32>
    %c80 = arith.constant 80 : index
    %c0_25 = arith.constant 0 : index
    %61 = vector.load %arg5[%c80, %c0_25] : memref<512x128xf32, #tpu.memory_space<vmem>>, vector<8x128xf32>
    tpu.vector_store %arg5[%c80, %c0_25], %60 {strides = array<i32>} : memref<512x128xf32, #tpu.memory_space<vmem>>, vector<8x128xf32>,
    %62 = vector.extract_strided_slice %36 {offsets = [0, 20], sizes = [8, 128], strides = [1, 1]} : vector<8x256xf32> to vector<8x128xf32>
    %c88 = arith.constant 88 : index
    %c0_26 = arith.constant 0 : index
    %63 = vector.load %arg5[%c88, %c0_26] : memref<512x128xf32, #tpu.memory_space<vmem>>, vector<8x128xf32>
    tpu.vector_store %arg5[%c88, %c0_26], %62 {strides = array<i32>} : memref<512x128xf32, #tpu.memory_space<vmem>>, vector<8x128xf32>,
    %64 = vector.extract_strided_slice %36 {offsets = [0, 21], sizes = [8, 128], strides = [1, 1]} : vector<8x256xf32> to vector<8x128xf32>
    %c96 = arith.constant 96 : index
    %c0_27 = arith.constant 0 : index
    %65 = vector.load %arg5[%c96, %c0_27] : memref<512x128xf32, #tpu.memory_space<vmem>>, vector<8x128xf32>
    tpu.vector_store %arg5[%c96, %c0_27], %64 {strides = array<i32>} : memref<512x128xf32, #tpu.memory_space<vmem>>, vector<8x128xf32>,
    %66 = vector.extract_strided_slice %36 {offsets = [0, 22], sizes = [8, 128], strides = [1, 1]} : vector<8x256xf32> to vector<8x128xf32>
    %c104 = arith.constant 104 : index
    %c0_28 = arith.constant 0 : index
    %67 = vector.load %arg5[%c104, %c0_28] : memref<512x128xf32, #tpu.memory_space<vmem>>, vector<8x128xf32>
    tpu.vector_store %arg5[%c104, %c0_28], %66 {strides = array<i32>} : memref<512x128xf32, #tpu.memory_space<vmem>>, vector<8x128xf32>,
    %68 = vector.extract_strided_slice %36 {offsets = [0, 32], sizes = [8, 128], strides = [1, 1]} : vector<8x256xf32> to vector<8x128xf32>
    %c112 = arith.constant 112 : index
    %c0_29 = arith.constant 0 : index
    %69 = vector.load %arg5[%c112, %c0_29] : memref<512x128xf32, #tpu.memory_space<vmem>>, vector<8x128xf32>
    tpu.vector_store %arg5[%c112, %c0_29], %68 {strides = array<i32>} : memref<512x128xf32, #tpu.memory_space<vmem>>, vector<8x128xf32>,
    %70 = vector.extract_strided_slice %36 {offsets = [0, 33], sizes = [8, 128], strides = [1, 1]} : vector<8x256xf32> to vector<8x128xf32>
    %c120 = arith.constant 120 : index
    %c0_30 = arith.constant 0 : index
    %71 = vector.load %arg5[%c120, %c0_30] : memref<512x128xf32, #tpu.memory_space<vmem>>, vector<8x128xf32>
    tpu.vector_store %arg5[%c120, %c0_30], %70 {strides = array<i32>} : memref<512x128xf32, #tpu.memory_space<vmem>>, vector<8x128xf32>,
    %72 = vector.extract_strided_slice %36 {offsets = [0, 34], sizes = [8, 128], strides = [1, 1]} : vector<8x256xf32> to vector<8x128xf32>
    %c128 = arith.constant 128 : index
    %c0_31 = arith.constant 0 : index
    %73 = vector.load %arg5[%c128, %c0_31] : memref<512x128xf32, #tpu.memory_space<vmem>>, vector<8x128xf32>
    tpu.vector_store %arg5[%c128, %c0_31], %72 {strides = array<i32>} : memref<512x128xf32, #tpu.memory_space<vmem>>, vector<8x128xf32>,
    %74 = vector.extract_strided_slice %36 {offsets = [0, 35], sizes = [8, 128], strides = [1, 1]} : vector<8x256xf32> to vector<8x128xf32>
    %c136 = arith.constant 136 : index
    %c0_32 = arith.constant 0 : index
    %75 = vector.load %arg5[%c136, %c0_32] : memref<512x128xf32, #tpu.memory_space<vmem>>, vector<8x128xf32>
    tpu.vector_store %arg5[%c136, %c0_32], %74 {strides = array<i32>} : memref<512x128xf32, #tpu.memory_space<vmem>>, vector<8x128xf32>,
    %76 = vector.extract_strided_slice %36 {offsets = [0, 36], sizes = [8, 128], strides = [1, 1]} : vector<8x256xf32> to vector<8x128xf32>
    %c144 = arith.constant 144 : index
    %c0_33 = arith.constant 0 : index
    %77 = vector.load %arg5[%c144, %c0_33] : memref<512x128xf32, #tpu.memory_space<vmem>>, vector<8x128xf32>
    tpu.vector_store %arg5[%c144, %c0_33], %76 {strides = array<i32>} : memref<512x128xf32, #tpu.memory_space<vmem>>, vector<8x128xf32>,
    %78 = vector.extract_strided_slice %36 {offsets = [0, 37], sizes = [8, 128], strides = [1, 1]} : vector<8x256xf32> to vector<8x128xf32>
    %c152 = arith.constant 152 : index
    %c0_34 = arith.constant 0 : index
    %79 = vector.load %arg5[%c152, %c0_34] : memref<512x128xf32, #tpu.memory_space<vmem>>, vector<8x128xf32>
    tpu.vector_store %arg5[%c152, %c0_34], %78 {strides = array<i32>} : memref<512x128xf32, #tpu.memory_space<vmem>>, vector<8x128xf32>,
    %80 = vector.extract_strided_slice %36 {offsets = [0, 38], sizes = [8, 128], strides = [1, 1]} : vector<8x256xf32> to vector<8x128xf32>
    %c160 = arith.constant 160 : index
    %c0_35 = arith.constant 0 : index
    %81 = vector.load %arg5[%c160, %c0_35] : memref<512x128xf32, #tpu.memory_space<vmem>>, vector<8x128xf32>
    tpu.vector_store %arg5[%c160, %c0_35], %80 {strides = array<i32>} : memref<512x128xf32, #tpu.memory_space<vmem>>, vector<8x128xf32>,
    %82 = vector.extract_strided_slice %36 {offsets = [0, 48], sizes = [8, 128], strides = [1, 1]} : vector<8x256xf32> to vector<8x128xf32>
    %c168 = arith.constant 168 : index
    %c0_36 = arith.constant 0 : index
    %83 = vector.load %arg5[%c168, %c0_36] : memref<512x128xf32, #tpu.memory_space<vmem>>, vector<8x128xf32>
    tpu.vector_store %arg5[%c168, %c0_36], %82 {strides = array<i32>} : memref<512x128xf32, #tpu.memory_space<vmem>>, vector<8x128xf32>,
    %84 = vector.extract_strided_slice %36 {offsets = [0, 49], sizes = [8, 128], strides = [1, 1]} : vector<8x256xf32> to vector<8x128xf32>
    %c176 = arith.constant 176 : index
    %c0_37 = arith.constant 0 : index
    %85 = vector.load %arg5[%c176, %c0_37] : memref<512x128xf32, #tpu.memory_space<vmem>>, vector<8x128xf32>
    tpu.vector_store %arg5[%c176, %c0_37], %84 {strides = array<i32>} : memref<512x128xf32, #tpu.memory_space<vmem>>, vector<8x128xf32>,
    %86 = vector.extract_strided_slice %36 {offsets = [0, 50], sizes = [8, 128], strides = [1, 1]} : vector<8x256xf32> to vector<8x128xf32>
    %c184 = arith.constant 184 : index
    %c0_38 = arith.constant 0 : index
    %87 = vector.load %arg5[%c184, %c0_38] : memref<512x128xf32, #tpu.memory_space<vmem>>, vector<8x128xf32>
    tpu.vector_store %arg5[%c184, %c0_38], %86 {strides = array<i32>} : memref<512x128xf32, #tpu.memory_space<vmem>>, vector<8x128xf32>,
    %88 = vector.extract_strided_slice %36 {offsets = [0, 51], sizes = [8, 128], strides = [1, 1]} : vector<8x256xf32> to vector<8x128xf32>
    %c192 = arith.constant 192 : index
    %c0_39 = arith.constant 0 : index
    %89 = vector.load %arg5[%c192, %c0_39] : memref<512x128xf32, #tpu.memory_space<vmem>>, vector<8x128xf32>
    tpu.vector_store %arg5[%c192, %c0_39], %88 {strides = array<i32>} : memref<512x128xf32, #tpu.memory_space<vmem>>, vector<8x128xf32>,
    %90 = vector.extract_strided_slice %36 {offsets = [0, 52], sizes = [8, 128], strides = [1, 1]} : vector<8x256xf32> to vector<8x128xf32>
    %c200 = arith.constant 200 : index
    %c0_40 = arith.constant 0 : index
    %91 = vector.load %arg5[%c200, %c0_40] : memref<512x128xf32, #tpu.memory_space<vmem>>, vector<8x128xf32>
    tpu.vector_store %arg5[%c200, %c0_40], %90 {strides = array<i32>} : memref<512x128xf32, #tpu.memory_space<vmem>>, vector<8x128xf32>,
    %92 = vector.extract_strided_slice %36 {offsets = [0, 53], sizes = [8, 128], strides = [1, 1]} : vector<8x256xf32> to vector<8x128xf32>
    %c208 = arith.constant 208 : index
    %c0_41 = arith.constant 0 : index
    %93 = vector.load %arg5[%c208, %c0_41] : memref<512x128xf32, #tpu.memory_space<vmem>>, vector<8x128xf32>
    tpu.vector_store %arg5[%c208, %c0_41], %92 {strides = array<i32>} : memref<512x128xf32, #tpu.memory_space<vmem>>, vector<8x128xf32>,
    %94 = vector.extract_strided_slice %36 {offsets = [0, 54], sizes = [8, 128], strides = [1, 1]} : vector<8x256xf32> to vector<8x128xf32>
    %c216 = arith.constant 216 : index
    %c0_42 = arith.constant 0 : index
    %95 = vector.load %arg5[%c216, %c0_42] : memref<512x128xf32, #tpu.memory_space<vmem>>, vector<8x128xf32>
    tpu.vector_store %arg5[%c216, %c0_42], %94 {strides = array<i32>} : memref<512x128xf32, #tpu.memory_space<vmem>>, vector<8x128xf32>,
    %96 = vector.extract_strided_slice %36 {offsets = [0, 64], sizes = [8, 128], strides = [1, 1]} : vector<8x256xf32> to vector<8x128xf32>
    %c224 = arith.constant 224 : index
    %c0_43 = arith.constant 0 : index
    %97 = vector.load %arg5[%c224, %c0_43] : memref<512x128xf32, #tpu.memory_space<vmem>>, vector<8x128xf32>
    tpu.vector_store %arg5[%c224, %c0_43], %96 {strides = array<i32>} : memref<512x128xf32, #tpu.memory_space<vmem>>, vector<8x128xf32>,
    %98 = vector.extract_strided_slice %36 {offsets = [0, 65], sizes = [8, 128], strides = [1, 1]} : vector<8x256xf32> to vector<8x128xf32>
    %c232 = arith.constant 232 : index
    %c0_44 = arith.constant 0 : index
    %99 = vector.load %arg5[%c232, %c0_44] : memref<512x128xf32, #tpu.memory_space<vmem>>, vector<8x128xf32>
    tpu.vector_store %arg5[%c232, %c0_44], %98 {strides = array<i32>} : memref<512x128xf32, #tpu.memory_space<vmem>>, vector<8x128xf32>,
    %100 = vector.extract_strided_slice %36 {offsets = [0, 66], sizes = [8, 128], strides = [1, 1]} : vector<8x256xf32> to vector<8x128xf32>
    %c240 = arith.constant 240 : index
    %c0_45 = arith.constant 0 : index
    %101 = vector.load %arg5[%c240, %c0_45] : memref<512x128xf32, #tpu.memory_space<vmem>>, vector<8x128xf32>
    tpu.vector_store %arg5[%c240, %c0_45], %100 {strides = array<i32>} : memref<512x128xf32, #tpu.memory_space<vmem>>, vector<8x128xf32>,
    %102 = vector.extract_strided_slice %36 {offsets = [0, 67], sizes = [8, 128], strides = [1, 1]} : vector<8x256xf32> to vector<8x128xf32>
    %c248 = arith.constant 248 : index
    %c0_46 = arith.constant 0 : index
    %103 = vector.load %arg5[%c248, %c0_46] : memref<512x128xf32, #tpu.memory_space<vmem>>, vector<8x128xf32>
    tpu.vector_store %arg5[%c248, %c0_46], %102 {strides = array<i32>} : memref<512x128xf32, #tpu.memory_space<vmem>>, vector<8x128xf32>,
    %104 = vector.extract_strided_slice %36 {offsets = [0, 68], sizes = [8, 128], strides = [1, 1]} : vector<8x256xf32> to vector<8x128xf32>
    %c256 = arith.constant 256 : index
    %c0_47 = arith.constant 0 : index
    %105 = vector.load %arg5[%c256, %c0_47] : memref<512x128xf32, #tpu.memory_space<vmem>>, vector<8x128xf32>
    tpu.vector_store %arg5[%c256, %c0_47], %104 {strides = array<i32>} : memref<512x128xf32, #tpu.memory_space<vmem>>, vector<8x128xf32>,
    %106 = vector.extract_strided_slice %36 {offsets = [0, 69], sizes = [8, 128], strides = [1, 1]} : vector<8x256xf32> to vector<8x128xf32>
    %c264 = arith.constant 264 : index
    %c0_48 = arith.constant 0 : index
    %107 = vector.load %arg5[%c264, %c0_48] : memref<512x128xf32, #tpu.memory_space<vmem>>, vector<8x128xf32>
    tpu.vector_store %arg5[%c264, %c0_48], %106 {strides = array<i32>} : memref<512x128xf32, #tpu.memory_space<vmem>>, vector<8x128xf32>,
    %108 = vector.extract_strided_slice %36 {offsets = [0, 70], sizes = [8, 128], strides = [1, 1]} : vector<8x256xf32> to vector<8x128xf32>
    %c272 = arith.constant 272 : index
    %c0_49 = arith.constant 0 : index
    %109 = vector.load %arg5[%c272, %c0_49] : memref<512x128xf32, #tpu.memory_space<vmem>>, vector<8x128xf32>
    tpu.vector_store %arg5[%c272, %c0_49], %108 {strides = array<i32>} : memref<512x128xf32, #tpu.memory_space<vmem>>, vector<8x128xf32>,
    %110 = vector.extract_strided_slice %36 {offsets = [0, 80], sizes = [8, 128], strides = [1, 1]} : vector<8x256xf32> to vector<8x128xf32>
    %c280 = arith.constant 280 : index
    %c0_50 = arith.constant 0 : index
    %111 = vector.load %arg5[%c280, %c0_50] : memref<512x128xf32, #tpu.memory_space<vmem>>, vector<8x128xf32>
    tpu.vector_store %arg5[%c280, %c0_50], %110 {strides = array<i32>} : memref<512x128xf32, #tpu.memory_space<vmem>>, vector<8x128xf32>,
    %112 = vector.extract_strided_slice %36 {offsets = [0, 81], sizes = [8, 128], strides = [1, 1]} : vector<8x256xf32> to vector<8x128xf32>
    %c288 = arith.constant 288 : index
    %c0_51 = arith.constant 0 : index
    %113 = vector.load %arg5[%c288, %c0_51] : memref<512x128xf32, #tpu.memory_space<vmem>>, vector<8x128xf32>
    tpu.vector_store %arg5[%c288, %c0_51], %112 {strides = array<i32>} : memref<512x128xf32, #tpu.memory_space<vmem>>, vector<8x128xf32>,
    %114 = vector.extract_strided_slice %36 {offsets = [0, 82], sizes = [8, 128], strides = [1, 1]} : vector<8x256xf32> to vector<8x128xf32>
    %c296 = arith.constant 296 : index
    %c0_52 = arith.constant 0 : index
    %115 = vector.load %arg5[%c296, %c0_52] : memref<512x128xf32, #tpu.memory_space<vmem>>, vector<8x128xf32>
    tpu.vector_store %arg5[%c296, %c0_52], %114 {strides = array<i32>} : memref<512x128xf32, #tpu.memory_space<vmem>>, vector<8x128xf32>,
    %116 = vector.extract_strided_slice %36 {offsets = [0, 83], sizes = [8, 128], strides = [1, 1]} : vector<8x256xf32> to vector<8x128xf32>
    %c304 = arith.constant 304 : index
    %c0_53 = arith.constant 0 : index
    %117 = vector.load %arg5[%c304, %c0_53] : memref<512x128xf32, #tpu.memory_space<vmem>>, vector<8x128xf32>
    tpu.vector_store %arg5[%c304, %c0_53], %116 {strides = array<i32>} : memref<512x128xf32, #tpu.memory_space<vmem>>, vector<8x128xf32>,
    %118 = vector.extract_strided_slice %36 {offsets = [0, 84], sizes = [8, 128], strides = [1, 1]} : vector<8x256xf32> to vector<8x128xf32>
    %c312 = arith.constant 312 : index
    %c0_54 = arith.constant 0 : index
    %119 = vector.load %arg5[%c312, %c0_54] : memref<512x128xf32, #tpu.memory_space<vmem>>, vector<8x128xf32>
    tpu.vector_store %arg5[%c312, %c0_54], %118 {strides = array<i32>} : memref<512x128xf32, #tpu.memory_space<vmem>>, vector<8x128xf32>,
    %120 = vector.extract_strided_slice %36 {offsets = [0, 85], sizes = [8, 128], strides = [1, 1]} : vector<8x256xf32> to vector<8x128xf32>
    %c320 = arith.constant 320 : index
    %c0_55 = arith.constant 0 : index
    %121 = vector.load %arg5[%c320, %c0_55] : memref<512x128xf32, #tpu.memory_space<vmem>>, vector<8x128xf32>
    tpu.vector_store %arg5[%c320, %c0_55], %120 {strides = array<i32>} : memref<512x128xf32, #tpu.memory_space<vmem>>, vector<8x128xf32>,
    %122 = vector.extract_strided_slice %36 {offsets = [0, 86], sizes = [8, 128], strides = [1, 1]} : vector<8x256xf32> to vector<8x128xf32>
    %c328 = arith.constant 328 : index
    %c0_56 = arith.constant 0 : index
    %123 = vector.load %arg5[%c328, %c0_56] : memref<512x128xf32, #tpu.memory_space<vmem>>, vector<8x128xf32>
    tpu.vector_store %arg5[%c328, %c0_56], %122 {strides = array<i32>} : memref<512x128xf32, #tpu.memory_space<vmem>>, vector<8x128xf32>,
    %124 = vector.extract_strided_slice %36 {offsets = [0, 96], sizes = [8, 128], strides = [1, 1]} : vector<8x256xf32> to vector<8x128xf32>
    %c336 = arith.constant 336 : index
    %c0_57 = arith.constant 0 : index
    %125 = vector.load %arg5[%c336, %c0_57] : memref<512x128xf32, #tpu.memory_space<vmem>>, vector<8x128xf32>
    tpu.vector_store %arg5[%c336, %c0_57], %124 {strides = array<i32>} : memref<512x128xf32, #tpu.memory_space<vmem>>, vector<8x128xf32>,
    %126 = vector.extract_strided_slice %36 {offsets = [0, 97], sizes = [8, 128], strides = [1, 1]} : vector<8x256xf32> to vector<8x128xf32>
    %c344 = arith.constant 344 : index
    %c0_58 = arith.constant 0 : index
    %127 = vector.load %arg5[%c344, %c0_58] : memref<512x128xf32, #tpu.memory_space<vmem>>, vector<8x128xf32>
    tpu.vector_store %arg5[%c344, %c0_58], %126 {strides = array<i32>} : memref<512x128xf32, #tpu.memory_space<vmem>>, vector<8x128xf32>,
    %128 = vector.extract_strided_slice %36 {offsets = [0, 98], sizes = [8, 128], strides = [1, 1]} : vector<8x256xf32> to vector<8x128xf32>
    %c352 = arith.constant 352 : index
    %c0_59 = arith.constant 0 : index
    %129 = vector.load %arg5[%c352, %c0_59] : memref<512x128xf32, #tpu.memory_space<vmem>>, vector<8x128xf32>
    tpu.vector_store %arg5[%c352, %c0_59], %128 {strides = array<i32>} : memref<512x128xf32, #tpu.memory_space<vmem>>, vector<8x128xf32>,
    %130 = vector.extract_strided_slice %36 {offsets = [0, 99], sizes = [8, 128], strides = [1, 1]} : vector<8x256xf32> to vector<8x128xf32>
    %c360 = arith.constant 360 : index
    %c0_60 = arith.constant 0 : index
    %131 = vector.load %arg5[%c360, %c0_60] : memref<512x128xf32, #tpu.memory_space<vmem>>, vector<8x128xf32>
    tpu.vector_store %arg5[%c360, %c0_60], %130 {strides = array<i32>} : memref<512x128xf32, #tpu.memory_space<vmem>>, vector<8x128xf32>,
    %132 = vector.extract_strided_slice %36 {offsets = [0, 100], sizes = [8, 128], strides = [1, 1]} : vector<8x256xf32> to vector<8x128xf32>
    %c368 = arith.constant 368 : index
    %c0_61 = arith.constant 0 : index
    %133 = vector.load %arg5[%c368, %c0_61] : memref<512x128xf32, #tpu.memory_space<vmem>>, vector<8x128xf32>
    tpu.vector_store %arg5[%c368, %c0_61], %132 {strides = array<i32>} : memref<512x128xf32, #tpu.memory_space<vmem>>, vector<8x128xf32>,
    %134 = vector.extract_strided_slice %36 {offsets = [0, 101], sizes = [8, 128], strides = [1, 1]} : vector<8x256xf32> to vector<8x128xf32>
    %c376 = arith.constant 376 : index
    %c0_62 = arith.constant 0 : index
    %135 = vector.load %arg5[%c376, %c0_62] : memref<512x128xf32, #tpu.memory_space<vmem>>, vector<8x128xf32>
    tpu.vector_store %arg5[%c376, %c0_62], %134 {strides = array<i32>} : memref<512x128xf32, #tpu.memory_space<vmem>>, vector<8x128xf32>,
    %136 = vector.extract_strided_slice %36 {offsets = [0, 102], sizes = [8, 128], strides = [1, 1]} : vector<8x256xf32> to vector<8x128xf32>
    %c384 = arith.constant 384 : index
    %c0_63 = arith.constant 0 : index
    %137 = vector.load %arg5[%c384, %c0_63] : memref<512x128xf32, #tpu.memory_space<vmem>>, vector<8x128xf32>
    tpu.vector_store %arg5[%c384, %c0_63], %136 {strides = array<i32>} : memref<512x128xf32, #tpu.memory_space<vmem>>, vector<8x128xf32>,
    %138 = vector.extract_strided_slice %36 {offsets = [0, 51], sizes = [8, 128], strides = [1, 1]} : vector<8x256xf32> to vector<8x128xf32>
    %c0_64 = arith.constant 0 : index
    %c0_65 = arith.constant 0 : index
    %139 = vector.load %arg2[%c0_64, %c0_65] : memref<1x128xf32, #tpu.memory_space<vmem>>, vector<1x128xf32>
    %140 = vector.broadcast %139 : vector<1x128xf32> to vector<8x128xf32>
    %141 = arith.mulf %138, %140 : vector<8x128xf32>
    %142 = arith.truncf %141 : vector<8x128xf32> to vector<8x128xbf16>
    %143 = arith.extf %142 : vector<8x128xbf16> to vector<8x128xf32>
    %144 = arith.subf %141, %143 : vector<8x128xf32>
    %c0_66 = arith.constant 0 : index
    %c0_67 = arith.constant 0 : index
    %145 = vector.load %arg5[%c0_66, %c0_67] : memref<512x128xf32, #tpu.memory_space<vmem>>, vector<512x128xf32>
    %cst_68 = arith.constant dense<0.000000e+00> : vector<8x512xf32>
    %146 = tpu.matmul %143, %145, %cst_68 {dimension_numbers = #tpu.dot_dimension_numbers<[1], [1], [0], [0], [0, 0, 1, 0], [], []>} : vector<8x128xf32>, vector<512x128xf32>, vector<8x512xf32> -> vector<8x512xf32>
    %cst_69 = arith.constant dense<0.000000e+00> : vector<8x512xf32>
    %147 = tpu.matmul %144, %145, %cst_69 {dimension_numbers = #tpu.dot_dimension_numbers<[1], [1], [0], [0], [0, 0, 1, 0], [], []>} : vector<8x128xf32>, vector<512x128xf32>, vector<8x512xf32> -> vector<8x512xf32>
    %148 = arith.addf %146, %147 : vector<8x512xf32>
    %c0_70 = arith.constant 0 : index
    %c0_71 = arith.constant 0 : index
    %149 = vector.load %arg4[%c0_70, %c0_71] : memref<8x512xf32, #tpu.memory_space<vmem>>, vector<8x512xf32>
    tpu.vector_store %arg4[%c0_70, %c0_71], %148 {strides = array<i32>} : memref<8x512xf32, #tpu.memory_space<vmem>>, vector<8x512xf32>,
    return
  }
}

</mosaic_0001>

<bundles_post_ra>
// kernel: tpu_custom_call.1
= control target key start
LH: loop header
LB: loop body
LE: loop exit
PB: predicated region body
PF: predicated region fallthrough
CT: control target
= control target key end

     0   :  { %10 = vsyncpa [#allocation4], 0  ;;  %s2045_s0 = inlined_call_operand.hbm [shape: f32[1,384], index: 0, kind: input, shape index: {}]   ;;  %s2046_s1 = inlined_call_operand.hbm [shape: f32[8,16], index: 1, kind: input, shape index: {}]   ;;  %s2047_s2 = inlined_call_operand.vmem [shape: f32[1,128], index: 2, kind: input, shape index: {}]   ;;  %s2048_s3 = inlined_call_operand.hbm [shape: f32[8,256], index: 3, kind: output, shape index: {0}]   ;;  %s2049_s4 = inlined_call_operand.hbm [shape: f32[8,512], index: 4, kind: output, shape index: {1}]  }
   0x1   :  { %11 = vsyncpa [#allocation7], 0 }
   0x2   :  { %12 = vsyncpa [#allocation5], 0 }
   0x3   :  { %13 = vsyncpa [#allocation10], 0  ;;  %s1470_s15 = smov [#allocation3]   ;;  %s1471_s17 = smov [#allocation6]  }
   0x4   :  { %s20_s16 = sshll.u32 %s1470_s15, 4  ;;  %s30_s18 = sshll.u32 %s1471_s17, 4  ;;  %s21_s16 = int_to_ptr.vmem [resolvable:$true] %s20_s16  ;;  %s31_s18 = int_to_ptr.vmem [resolvable:$true] %s30_s18 }
   0x5   :  { %s1390_s19 = scalar_lea.vmem %s21_s16, 48  ;;  %s1394_s20 = scalar_lea.vmem %s21_s16, 64 }
   0x6   :  { %p1391_p0 = scmp.ne.s32.totalorder %s21_s16, %s1390_s19  ;;  %p1395_p1 = scmp.lt.s32.totalorder %s21_s16, %s21_s16 }
   0x7   :  { %p1396_p2 = scmp.lt.s32.totalorder %s1394_s20, %s1390_s19 }
   0x9   :  { %p1397_p3 = por %p1396_p2, %p1395_p1 }
   0xb   :  { %p1398_p4 = pnand %p1397_p3, %p1391_p0 }
   0xd   :  { %1401 = shalt.err (!%p1398_p4)
}
   0xe   :  { %23 = dma.hbm_to_vmem [thread:$0]  %s2045_s0, 48, %s21_s16, [#allocation4]  }
   0xf   :  { %s1410_s23 = scalar_lea.vmem %s31_s18, 128  ;;  %p1415_p6 = scmp.lt.s32.totalorder %s31_s18, %s31_s18 }
  0x10   :  { %p1411_p5 = scmp.ne.s32.totalorder %s31_s18, %s1410_s23  ;;  %p1416_p7 = scmp.lt.s32.totalorder %s1410_s23, %s1410_s23 }
  0x12   :  { %p1417_p8 = por %p1416_p7, %p1415_p6 }
  0x14   :  { %p1418_p9 = pnand %p1417_p8, %p1411_p5 }
  0x16   :  { %1421 = shalt.err (!%p1418_p9)
}
  0x17   :  { %33 = dma.hbm_to_vmem [thread:$0]  %s2046_s1, 128, %s31_s18, [#allocation7]  }
  0x18   :  { %1462 = dma.done.wait [#allocation4], 48  }
  0x19   :  { %1463 = vsyncadd [#allocation4], 4294967248 }
  0x1a   :  { %1464 = dma.done.wait [#allocation7], 128  }
  0x1b   :  { %1465 = vsyncadd [#allocation7], 4294967168  ;;  %v44_v0 = vlaneseq  ;;  %v42_v5 = vld [vmem:[#allocation3] sm:$0x7]  ;;  %s1472_s0 = smov 127   ;;  %s1473_s1 = smov 126  }
  0x1c   :  { %s1474_s26 = smov 112   ;;  %s1475_s27 = smov 111   ;;  %v1479_v9 = vmov 0.0   ;;  %v1245_v10 = vld [vmem:[%s2047_s2] ss:$0 sm:$0xff]  ;;  %vm75_vm0 = vcmask 1031168  }
  0x1d   :  { %v45_v1 = vshrl.u32 %v44_v0, 7  ;;  %s1476_s28 = smov 110   ;;  %s1477_s29 = smov 96   ;;  %251 = vmatprep.mubr.f32.mxu1 %v1479_v9  ;;  %396 = vmatprep.mubr.f32.mxu0 %v1479_v9  ;;  %vm64_vm1 = vcmask 1039360   ;;  %vm86_vm2 = vcmask 916480   ;;  %vm97_vm3 = vcmask 908288  }
  0x1e   :  { %s1478_s30 = smov 95   ;;  %s1480_s5 = smov 94   ;;  %vm146_vm4 = vcmask 1040384   ;;  %vm149_vm5 = vcmask 1041408   ;;  %vm108_vm6 = vcmask 900096   ;;  %vm152_vm7 = vcmask 1042432  }
  0x1f   :  { %v50_v2 = vsub.s32 1, %v45_v1  ;;  %v46_v3 = vsub.s32 0, %v45_v1  ;;  %v56_v4 = vsub.s32 2, %v45_v1  ;;  %s1481_s8 = smov 51   ;;  %vm155_vm8 = vcmask 1043456   ;;  %v169_v39 = vld [vmem:[#allocation6] sm:$0xff] }
  0x20   :  { %vm119_vm9 = vcmask 785408   ;;  %vm158_vm10 = vcmask 1044480   ;;  %vm130_vm11 = vcmask 777216   ;;  %vm161_vm12 = vcmask 1045504   ;;  %s1482_s2 = smov 28   ;;  %s1483_s9 = smov 27  }
  0x21   :  { %v1555_v6 = vrot.slane %v42_v5, %v50_v2  ;;  %v1557_v7 = vrot.slane %v42_v5, %v46_v3  ;;  %v57_v8 = vrot.slane %v42_v5, %v56_v4  ;;  %vm141_vm13 = vcmask 769024   ;;  %s1484_s10 = smov 61   ;;  %s1485_s11 = smov 29  }
  0x22   :  { %vm164_vm14 = vcmask 1046528   ;;  %v170_v51 = vpack.c.bf16 %v169_v39, %v169_v39  ;;  %vm183_vm15 = vcmask 130048   ;;  %s1486_s12 = smov 62   ;;  %s1487_s13 = smov 30  }
  0x23   :  { %60 = vrot.lane.b32.xlu0 %v1555_v6, %s1472_s0  ;;  %58 = vrot.lane.b32.xlu1 %v1557_v7, %s1472_s0  ;;  %s1488_s14 = smov 63   ;;  %s1489_s15 = smov 106  }
  0x24   :  { %s1490_s16 = smov 31   ;;  %s1491_s17 = smov 64  }
  0x25   :  { %s1492_s18 = smov 107   ;;  %s1493_s19 = smov 32  }
  0x26   :  { %s1494_s20 = smov 74   ;;  %s1495_s21 = smov 108  }
  0x27   :  { %62 = vrot.lane.b32.xlu0 %v57_v8, %s1472_s0  ;;  %71 = vrot.lane.b32.xlu1 %v1555_v6, %s1473_s1  ;;  %s1496_s22 = smov 42   ;;  %s1497_s23 = smov 75  }
  0x28   :  { %s1498_s24 = smov 109   ;;  %s1499_s25 = smov 43  }
  0x29   :  { %s1502_s6 = smov 77   ;;  %s1503_s7 = smov 45  }
  0x2b   :  { %73 = vrot.lane.b32.xlu0 %v57_v8, %s1473_s1  ;;  %69 = vrot.lane.b32.xlu1 %v1557_v7, %s1473_s1 }
  0x2f   :  { %82 = vrot.lane.b32.xlu0 %v1555_v6, %s1474_s26  ;;  %84 = vrot.lane.b32.xlu1 %v57_v8, %s1474_s26 }
  0x33   :  { %80 = vrot.lane.b32.xlu0 %v1557_v7, %s1474_s26  ;;  %93 = vrot.lane.b32.xlu1 %v1555_v6, %s1475_s27 }
  0x37   :  { %95 = vrot.lane.b32.xlu0 %v57_v8, %s1475_s27  ;;  %91 = vrot.lane.b32.xlu1 %v1557_v7, %s1475_s27 }
  0x3b   :  { %104 = vrot.lane.b32.xlu0 %v1555_v6, %s1476_s28  ;;  %106 = vrot.lane.b32.xlu1 %v57_v8, %s1476_s28 }
  0x3f   :  { %102 = vrot.lane.b32.xlu0 %v1557_v7, %s1476_s28  ;;  %115 = vrot.lane.b32.xlu1 %v1555_v6, %s1477_s29 }
  0x43   :  { %117 = vrot.lane.b32.xlu0 %v57_v8, %s1477_s29  ;;  %113 = vrot.lane.b32.xlu1 %v1557_v7, %s1477_s29 }
  0x47   :  { %126 = vrot.lane.b32.xlu0 %v1555_v6, %s1478_s30  ;;  %128 = vrot.lane.b32.xlu1 %v57_v8, %s1478_s30 }
  0x4b   :  { %137 = vrot.lane.b32.xlu0 %v1555_v6, %s1480_s5  ;;  %139 = vrot.lane.b32.xlu1 %v57_v8, %s1480_s5 }
  0x4f   :  { %124 = vrot.lane.b32.xlu0 %v1557_v7, %s1478_s30  ;;  %135 = vrot.lane.b32.xlu1 %v1557_v7, %s1480_s5 }
  0x53   :  { %833 = vrot.lane.b32.xlu0 %v1245_v10, %s1481_s8  ;;  %s1504_s8 = smov 78  }
  0x95   :  { %v61_v11 = vpop.permute.xlu0 %60  ;;  %v59_v12 = vpop.permute.xlu1 %58 }
  0x96   :  { %v65_v36 = vsel %vm64_vm1, %v59_v12, %v61_v11 }
  0x97   :  { %v147_v46 = vsel %vm146_vm4, %v1557_v7, %v65_v36  ;;  %v171_v7 = vunpack.c.l.bf16 %v170_v51 }
  0x99   :  { %v63_v13 = vpop.permute.xlu0 %62  ;;  %v72_v14 = vpop.permute.xlu1 %71 }
  0x9a   :  { %v66_v29 = vsel %vm64_vm1, %v61_v11, %v63_v13 }
  0x9b   :  { %v148_v32 = vsel %vm146_vm4, %v1555_v6, %v66_v29 }
  0x9d   :  { %v74_v15 = vpop.permute.xlu0 %73  ;;  %v70_v16 = vpop.permute.xlu1 %69 }
  0x9e   :  { %v77_v30 = vsel %vm75_vm0, %v72_v14, %v74_v15  ;;  %v76_v40 = vsel %vm75_vm0, %v70_v16, %v72_v14  ;;  %v172_v14 = vsub.f32 %v169_v39, %v171_v7 }
  0x9f   :  { %v151_v37 = vsel %vm149_vm5, %v148_v32, %v77_v30  ;;  %v150_v52 = vsel %vm149_vm5, %v147_v46, %v76_v40  ;;  %vm687_vm5 = vcmask 498688  }
  0xa1   :  { %v83_v17 = vpop.permute.xlu0 %82  ;;  %v85_v18 = vpop.permute.xlu1 %84 }
  0xa2   :  { %v88_v31 = vsel %vm86_vm2, %v83_v17, %v85_v18 }
  0xa3   :  { %v154_v41 = vsel %vm152_vm7, %v151_v37, %v88_v31 }
  0xa5   :  { %v81_v19 = vpop.permute.xlu0 %80  ;;  %v94_v20 = vpop.permute.xlu1 %93 }
  0xa6   :  { %v87_v43 = vsel %vm86_vm2, %v81_v19, %v83_v17 }
  0xa7   :  { %v153_v56 = vsel %vm152_vm7, %v150_v52, %v87_v43  ;;  %vm799_vm7 = vcmask 236544  }
  0xa9   :  { %v96_v21 = vpop.permute.xlu0 %95  ;;  %v92_v22 = vpop.permute.xlu1 %91 }
  0xaa   :  { %v99_v33 = vsel %vm97_vm3, %v94_v20, %v96_v21  ;;  %v98_v47 = vsel %vm97_vm3, %v92_v22, %v94_v20 }
  0xab   :  { %v157_v44 = vsel %vm155_vm8, %v154_v41, %v99_v33  ;;  %v156_v60 = vsel %vm155_vm8, %v153_v56, %v98_v47  ;;  %vm679_vm8 = vcmask 506880  }
  0xad   :  { %v105_v23 = vpop.permute.xlu0 %104  ;;  %v107_v24 = vpop.permute.xlu1 %106 }
  0xae   :  { %v110_v38 = vsel %vm108_vm6, %v105_v23, %v107_v24 }
  0xaf   :  { %v160_v48 = vsel %vm158_vm10, %v157_v44, %v110_v38 }
  0xb1   :  { %v103_v25 = vpop.permute.xlu0 %102  ;;  %v116_v26 = vpop.permute.xlu1 %115 }
  0xb2   :  { %v109_v53 = vsel %vm108_vm6, %v103_v25, %v105_v23 }
  0xb3   :  { %v159_v62 = vsel %vm158_vm10, %v156_v60, %v109_v53  ;;  %vm791_vm10 = vcmask 244736  }
  0xb5   :  { %v118_v27 = vpop.permute.xlu0 %117  ;;  %v114_v28 = vpop.permute.xlu1 %113 }
  0xb6   :  { %v121_v42 = vsel %vm119_vm9, %v116_v26, %v118_v27  ;;  %v120_v57 = vsel %vm119_vm9, %v114_v28, %v116_v26 }
  0xb7   :  { %v163_v54 = vsel %vm161_vm12, %v160_v48, %v121_v42  ;;  %v162_v1 = vsel %vm161_vm12, %v159_v62, %v120_v57  ;;  %vm783_vm12 = vcmask 252928  }
  0xb9   :  { %v127_v34 = vpop.permute.xlu0 %126  ;;  %v129_v35 = vpop.permute.xlu1 %128 }
  0xba   :  { %v132_v45 = vsel %vm130_vm11, %v127_v34, %v129_v35 }
  0xbb   :  { %v166_v58 = vsel %vm164_vm14, %v163_v54, %v132_v45 }
  0xbd   :  { %v138_v49 = vpop.permute.xlu0 %137  ;;  %v140_v50 = vpop.permute.xlu1 %139 }
  0xbe   :  { %v143_v55 = vsel %vm141_vm13, %v138_v49, %v140_v50 }
  0xbf   :  { %v168_v59 = vsel %vm146_vm4, %v143_v55, 0.0 }
  0xc0   :  { %v174_v61 = vpack.c.bf16 %v168_v59, %v166_v58 }
  0xc1   :  { %v125_v63 = vpop.permute.xlu0 %124  ;;  %v136_v0 = vpop.permute.xlu1 %135 }
  0xc2   :  { %v131_v2 = vsel %vm130_vm11, %v125_v63, %v127_v34  ;;  %v142_v3 = vsel %vm141_vm13, %v136_v0, %v138_v49  ;;  %v178_v4 = vunpack.c.h.bf16 %v174_v61  ;;  %v176_v12 = vunpack.c.l.bf16 %v174_v61 }
  0xc3   :  { %v165_v5 = vsel %vm164_vm14, %v162_v1, %v131_v2  ;;  %v167_v6 = vsel %vm146_vm4, %v142_v3, 0.0  ;;  %vm807_vm4 = vcmask 228352   ;;  %vm663_vm14 = vcmask 523264  }
  0xc4   :  { %v173_v8 = vpack.c.bf16 %v167_v6, %v165_v5  ;;  %215 = vmatprep.subr.mxu1 %v178_v4  ;;  %v182_v10 = vsub.f32 %v168_v59, %v178_v4  ;;  %v180_v16 = vsub.f32 %v166_v58, %v176_v12 }
  0xc5   :  { %v1716_v54 = vpop.permute.xlu0 %833 }
  0xc6   :  { %360 = vmatprep.subr.mxu0 %v182_v10  ;;  %v177_v11 = vunpack.c.h.bf16 %v173_v8  ;;  %v175_v13 = vunpack.c.l.bf16 %v173_v8 }
  0xc8   :  { %216 = vmatpush1.msra.mxu1 %v177_v11  ;;  %v181_v15 = vsub.f32 %v167_v6, %v177_v11  ;;  %v179_v17 = vsub.f32 %v165_v5, %v175_v13 }
  0xc9   :  { %217 = vmatprep.subr.mxu1 %v176_v12 }
  0xca   :  { %218 = vmatpush1.msra.mxu1 %v175_v13  ;;  %361 = vmatpush1.msra.mxu0 %v181_v15 }
  0xcb   :  { %1242 = vmatmul.mubr.msk.f32.vlgmr.msra.gmra.mxu1 %vm183_vm15, %v172_v14  ;;  %289 = vmatprep.subr.mxu1 %v178_v4 }
  0xcc   :  { %362 = vmatprep.subr.mxu0 %v180_v16  ;;  %290 = vmatpush1.msra.mxu1 %v177_v11 }
  0xcd   :  { %363 = vmatpush1.msra.mxu0 %v179_v17  ;;  %291 = vmatprep.subr.mxu1 %v176_v12 }
  0xce   :  { %292 = vmatpush1.msra.mxu1 %v175_v13  ;;  %325 = vmatprep.mubr.f32.mxu1 %v1479_v9 }
  0xcf   :  { %1243 = vmatmul.mubr.msk.f32.vlgmr.msra.gmra.mxu1 %vm183_vm15, %v171_v7  ;;  %1244 = vmatmul.mubr.msk.f32.vlgmr.msra.gmra.mxu0 %vm183_vm15, %v171_v7  ;;  %vm538_vm15 = vcmask 875520  }
  0xd0   :  { %987 = vmatprep.subr.mxu0 %v1479_v9  ;;  %1051 = vmatprep.mubr.f32.mxu0 %v1479_v9 }
 0x18b   :  { %v253_v18 = vpop.f32.mrf.mxu1 }
 0x18d   :  { %v255_v19 = vpop.f32.mrf.mxu1 }
 0x18f   :  { %v327_v20 = vpop.f32.mrf.mxu1  ;;  %v398_v21 = vpop.f32.mrf.mxu0 }
 0x190   :  { %v328_v22 = vadd.f32 %v327_v20, %v253_v18 }
 0x191   :  { %v329_v23 = vpop.f32.mrf.mxu1  ;;  %v400_v26 = vpop.f32.mrf.mxu0 }
 0x192   :  { %v403_v24 = vadd.f32 %v398_v21, %v328_v22  ;;  %v330_v25 = vadd.f32 %v329_v23, %v255_v19 }
 0x194   :  { %v405_v27 = vmax.f32 %v403_v24, 0.0  ;;  %v404_v28 = vadd.f32 %v400_v26, %v330_v25 }
 0x196   :  { %v407_v29 = vrot.slane %v405_v27, 4  ;;  %v406_v30 = vmax.f32 %v404_v28, 0.0 }
 0x198   :  { %v408_v31 = vadd.f32 %v407_v29, %v405_v27  ;;  %v413_v32 = vrot.slane %v406_v30, 4 }
 0x19a   :  { %v409_v33 = vrot.slane %v408_v31, 2  ;;  %v414_v34 = vadd.f32 %v413_v32, %v406_v30 }
 0x19c   :  { %v410_v35 = vadd.f32 %v409_v33, %v408_v31  ;;  %v415_v36 = vrot.slane %v414_v34, 2 }
 0x19e   :  { %v411_v37 = vrot.slane %v410_v35, 1  ;;  %v416_v38 = vadd.f32 %v415_v36, %v414_v34 }
 0x1a0   :  { %v412_v39 = vadd.f32 %v411_v37, %v410_v35  ;;  %v417_v40 = vrot.slane %v416_v38, 1 }
 0x1a2   :  { %v419_v41 = vadd.f32 2.220446e-16, %v412_v39  ;;  %v418_v42 = vadd.f32 %v417_v40, %v416_v38 }
 0x1a4   :  { %1378 = vrcp.f32 %v419_v41  ;;  %v420_v43 = vadd.f32 2.220446e-16, %v418_v42 }
 0x1a6   :  { %1380 = vrcp.f32 %v420_v43 }
 0x1b1   :  { %v1379_v44 = vpop.eup %1378 }
 0x1b2   :  { %v423_v45 = vmul.f32 %v1379_v44, %v419_v41 }
 0x1b3   :  { %v1381_v46 = vpop.eup %1380 }
 0x1b4   :  { %v425_v47 = vsub.f32 2.0, %v423_v45  ;;  %v424_v48 = vmul.f32 %v1381_v46, %v420_v43 }
 0x1b6   :  { %v427_v49 = vmul.f32 %v1379_v44, %v425_v47  ;;  %v426_v50 = vsub.f32 2.0, %v424_v48 }
 0x1b8   :  { %v1641_v51 = vmul.f32 %v427_v49, %v405_v27  ;;  %v428_v52 = vmul.f32 %v1381_v46, %v426_v50 }
 0x1ba   :  { %431 = vst [vmem:[#allocation8] sm:$0xff] %v1641_v51  ;;  %v1644_v53 = vmul.f32 %v428_v52, %v406_v30  ;;  %803 = vrot.lane.b32.xlu1 %v1641_v51, %s1482_s2  ;;  %811 = vrot.lane.b32.xlu0 %v1641_v51, %s1483_s9  ;;  %v836_v40 = vmul.f32 %v1716_v54, %v1641_v51 }
 0x1bc   :  { %432 = vst [vmem:[#allocation8 + $0x8] sm:$0xff] %v1644_v53  ;;  %v837_v38 = vmul.f32 %v1716_v54, %v1644_v53  ;;  %v838_v45 = vpack.c.bf16 %v836_v40, %v836_v40 }
 0x1be   :  { %683 = vrot.lane.b32.xlu1 %v1641_v51, %s1484_s10  ;;  %805 = vrot.lane.b32.xlu0 %v1644_v53, %s1482_s2  ;;  %s1506_s2 = smov 79   ;;  %v839_v43 = vpack.c.bf16 %v837_v38, %v837_v38  ;;  %v840_v50 = vunpack.c.l.bf16 %v838_v45 }
 0x1c0   :  { %v841_v48 = vunpack.c.l.bf16 %v839_v43 }
 0x1c2   :  { %557 = vrot.lane.b32.xlu1 %v1641_v51, %s1478_s30  ;;  %685 = vrot.lane.b32.xlu0 %v1644_v53, %s1484_s10  ;;  %s1509_s10 = smov 80  }
 0x1c6   :  { %795 = vrot.lane.b32.xlu1 %v1641_v51, %s1485_s11  ;;  %559 = vrot.lane.b32.xlu0 %v1644_v53, %s1478_s30  ;;  %s1501_s30 = smov 44  }
 0x1ca   :  { %675 = vrot.lane.b32.xlu1 %v1641_v51, %s1486_s12  ;;  %797 = vrot.lane.b32.xlu0 %v1644_v53, %s1485_s11  ;;  %s1510_s11 = smov 123  }
 0x1ce   :  { %550 = vrot.lane.b32.xlu1 %v1641_v51, %s1477_s29  ;;  %677 = vrot.lane.b32.xlu0 %v1644_v53, %s1486_s12  ;;  %s1512_s12 = smov 90  }
 0x1d2   :  { %787 = vrot.lane.b32.xlu1 %v1641_v51, %s1487_s13  ;;  %552 = vrot.lane.b32.xlu0 %v1644_v53, %s1477_s29  ;;  %s1500_s29 = smov 76  }
 0x1d6   :  { %667 = vrot.lane.b32.xlu1 %v1641_v51, %s1488_s14  ;;  %789 = vrot.lane.b32.xlu0 %v1644_v53, %s1487_s13  ;;  %s1513_s13 = smov 124  }
 0x1da   :  { %542 = vrot.lane.b32.xlu1 %v1641_v51, %s1489_s15  ;;  %669 = vrot.lane.b32.xlu0 %v1644_v53, %s1488_s14  ;;  %s1514_s14 = smov 58  }
 0x1de   :  { %779 = vrot.lane.b32.xlu1 %v1641_v51, %s1490_s16  ;;  %544 = vrot.lane.b32.xlu0 %v1644_v53, %s1489_s15  ;;  %s1515_s15 = smov 91  }
 0x1e2   :  { %659 = vrot.lane.b32.xlu1 %v1641_v51, %s1491_s17  ;;  %781 = vrot.lane.b32.xlu0 %v1644_v53, %s1490_s16  ;;  %s1516_s16 = smov 125  }
 0x1e6   :  { %534 = vrot.lane.b32.xlu1 %v1641_v51, %s1492_s18  ;;  %661 = vrot.lane.b32.xlu0 %v1644_v53, %s1491_s17  ;;  %s1517_s17 = smov 59  }
 0x1ea   :  { %771 = vrot.lane.b32.xlu1 %v1641_v51, %s1493_s19  ;;  %536 = vrot.lane.b32.xlu0 %v1644_v53, %s1492_s18  ;;  %s1518_s18 = smov 92  }
 0x1ee   :  { %651 = vrot.lane.b32.xlu1 %v1641_v51, %s1494_s20  ;;  %773 = vrot.lane.b32.xlu0 %v1644_v53, %s1493_s19  ;;  %s1519_s19 = smov 60  }
 0x1f2   :  { %526 = vrot.lane.b32.xlu1 %v1641_v51, %s1495_s21  ;;  %653 = vrot.lane.b32.xlu0 %v1644_v53, %s1494_s20  ;;  %s1521_s20 = smov 26  }
 0x1f6   :  { %763 = vrot.lane.b32.xlu1 %v1641_v51, %s1496_s22  ;;  %528 = vrot.lane.b32.xlu0 %v1644_v53, %s1495_s21 }
 0x1fa   :  { %643 = vrot.lane.b32.xlu1 %v1641_v51, %s1497_s23  ;;  %765 = vrot.lane.b32.xlu0 %v1644_v53, %s1496_s22 }
 0x1fe   :  { %518 = vrot.lane.b32.xlu1 %v1641_v51, %s1498_s24  ;;  %645 = vrot.lane.b32.xlu0 %v1644_v53, %s1497_s23 }
 0x202   :  { %755 = vrot.lane.b32.xlu1 %v1641_v51, %s1499_s25  ;;  %520 = vrot.lane.b32.xlu0 %v1644_v53, %s1498_s24 }
 0x206   :  { %635 = vrot.lane.b32.xlu1 %v1641_v51, %s1500_s29  ;;  %757 = vrot.lane.b32.xlu0 %v1644_v53, %s1499_s25 }
 0x20a   :  { %511 = vrot.lane.b32.xlu1 %v1641_v51, %s1476_s28  ;;  %637 = vrot.lane.b32.xlu0 %v1644_v53, %s1500_s29 }
 0x20e   :  { %747 = vrot.lane.b32.xlu1 %v1641_v51, %s1501_s30  ;;  %513 = vrot.lane.b32.xlu0 %v1644_v53, %s1476_s28  ;;  %s1505_s28 = smov 46  }
 0x212   :  { %627 = vrot.lane.b32.xlu1 %v1641_v51, %s1502_s6  ;;  %749 = vrot.lane.b32.xlu0 %v1644_v53, %s1501_s30 }
 0x216   :  { %504 = vrot.lane.b32.xlu1 %v1641_v51, %s1475_s27  ;;  %629 = vrot.lane.b32.xlu0 %v1644_v53, %s1502_s6 }
 0x21a   :  { %739 = vrot.lane.b32.xlu1 %v1641_v51, %s1503_s7  ;;  %506 = vrot.lane.b32.xlu0 %v1644_v53, %s1475_s27  ;;  %s1507_s27 = smov 122  }
 0x21e   :  { %619 = vrot.lane.b32.xlu1 %v1641_v51, %s1504_s8  ;;  %741 = vrot.lane.b32.xlu0 %v1644_v53, %s1503_s7 }
 0x222   :  { %497 = vrot.lane.b32.xlu1 %v1641_v51, %s1474_s26  ;;  %621 = vrot.lane.b32.xlu0 %v1644_v53, %s1504_s8 }
 0x226   :  { %731 = vrot.lane.b32.xlu1 %v1641_v51, %s1505_s28  ;;  %499 = vrot.lane.b32.xlu0 %v1644_v53, %s1474_s26  ;;  %s1508_s26 = smov 47  }
 0x22a   :  { %611 = vrot.lane.b32.xlu1 %v1641_v51, %s1506_s2  ;;  %733 = vrot.lane.b32.xlu0 %v1644_v53, %s1505_s28 }
 0x22c   :  { %v804_v55 = vpop.permute.xlu1 %803  ;;  %v1720_v56 = vpop.permute.xlu0 %811 }
 0x22e   :  { %489 = vrot.lane.b32.xlu1 %v1641_v51, %s1507_s27  ;;  %613 = vrot.lane.b32.xlu0 %v1644_v53, %s1506_s2 }
 0x230   :  { %v684_v57 = vpop.permute.xlu1 %683  ;;  %v806_v58 = vpop.permute.xlu0 %805 }
 0x231   :  { %v1724_v59 = vsel %vm807_vm4, %v804_v55, %v806_v58  ;;  %vm775_vm4 = vcmask 261120   ;;  %v843_v55 = vsub.f32 %v837_v38, %v841_v48  ;;  %v842_v58 = vsub.f32 %v836_v40, %v840_v50 }
 0x232   :  { %723 = vrot.lane.b32.xlu1 %v1641_v51, %s1508_s26  ;;  %491 = vrot.lane.b32.xlu0 %v1644_v53, %s1507_s27 }
 0x234   :  { %v558_v60 = vpop.permute.xlu1 %557  ;;  %v686_v61 = vpop.permute.xlu0 %685 }
 0x235   :  { %v1728_v62 = vsel %vm687_vm5, %v684_v57, %v686_v61  ;;  %vm655_vm5 = vcmask 605184  }
 0x236   :  { %725 = vrot.lane.b32.xlu0 %v1644_v53, %s1508_s26  ;;  %1246 = vmatprep.subr.mxu1 %v1728_v62 }
 0x237   :  { %813 = vrot.lane.b32.xlu1 %v1644_v53, %s1483_s9  ;;  %s1511_s9 = smov 48  }
 0x238   :  { %v796_v63 = vpop.permute.xlu1 %795  ;;  %v560_v0 = vpop.permute.xlu0 %559 }
 0x239   :  { %v1735_v1 = vsel %vm130_vm11, %v558_v60, %v560_v0  ;;  %vm671_vm11 = vcmask 515072  }
 0x23a   :  { %605 = vrot.lane.b32.xlu0 %v1644_v53, %s1509_s10  ;;  %1247 = vmatpush3.xpose.msra.mxu1 %v1735_v1 }
 0x23b   :  { %603 = vrot.lane.b32.xlu1 %v1641_v51, %s1509_s10 }
 0x23c   :  { %v676_v2 = vpop.permute.xlu1 %675  ;;  %v798_v3 = vpop.permute.xlu0 %797 }
 0x23d   :  { %v1740_v4 = vsel %vm799_vm7, %v796_v63, %v798_v3  ;;  %vm530_vm7 = vcmask 883712   ;;  %v1373_v63 = vpack.i.bf16 %v841_v48, %v840_v50 }
 0x23e   :  { %483 = vrot.lane.b32.xlu0 %v1644_v53, %s1510_s11 }
 0x23f   :  { %481 = vrot.lane.b32.xlu1 %v1641_v51, %s1510_s11 }
 0x240   :  { %v551_v5 = vpop.permute.xlu1 %550  ;;  %v678_v6 = vpop.permute.xlu0 %677 }
 0x241   :  { %v1744_v7 = vsel %vm679_vm8, %v676_v2, %v678_v6  ;;  %vm767_vm8 = vcmask 343040   ;;  %v1368_v2 = vpack.i.bf16 %v843_v55, %v842_v58 }
 0x242   :  { %717 = vrot.lane.b32.xlu0 %v1644_v53, %s1511_s9  ;;  %1248 = vmatprep.subr.mxu1 %v1744_v7 }
 0x243   :  { %715 = vrot.lane.b32.xlu1 %v1641_v51, %s1511_s9 }
 0x244   :  { %v788_v8 = vpop.permute.xlu1 %787  ;;  %v553_v10 = vpop.permute.xlu0 %552 }
 0x245   :  { %v1750_v11 = vsel %vm119_vm9, %v551_v5, %v553_v10  ;;  %vm546_vm9 = vcmask 867328  }
 0x246   :  { %597 = vrot.lane.b32.xlu0 %v1644_v53, %s1512_s12  ;;  %1249 = vmatpush3.xpose.msra.mxu1 %v1750_v11 }
 0x247   :  { %595 = vrot.lane.b32.xlu1 %v1641_v51, %s1512_s12 }
 0x248   :  { %v668_v12 = vpop.permute.xlu1 %667  ;;  %v790_v13 = vpop.permute.xlu0 %789 }
 0x249   :  { %v1755_v14 = vsel %vm791_vm10, %v788_v8, %v790_v13  ;;  %vm647_vm10 = vcmask 613376  }
 0x24a   :  { %475 = vrot.lane.b32.xlu0 %v1644_v53, %s1513_s13 }
 0x24b   :  { %473 = vrot.lane.b32.xlu1 %v1641_v51, %s1513_s13 }
 0x24c   :  { %v543_v15 = vpop.permute.xlu1 %542  ;;  %v670_v16 = vpop.permute.xlu0 %669 }
 0x24d   :  { %v1759_v17 = vsel %vm671_vm11, %v668_v12, %v670_v16  ;;  %vm522_vm11 = vcmask 891904  }
 0x24e   :  { %709 = vrot.lane.b32.xlu0 %v1644_v53, %s1514_s14  ;;  %1250 = vmatprep.subr.mxu1 %v1759_v17 }
 0x24f   :  { %707 = vrot.lane.b32.xlu1 %v1641_v51, %s1514_s14 }
 0x250   :  { %v780_v18 = vpop.permute.xlu1 %779  ;;  %v545_v19 = vpop.permute.xlu0 %544 }
 0x251   :  { %v1764_v20 = vsel %vm546_vm9, %v543_v15, %v545_v19  ;;  %vm759_vm9 = vcmask 351232  }
 0x252   :  { %589 = vrot.lane.b32.xlu0 %v1644_v53, %s1515_s15  ;;  %1251 = vmatpush3.xpose.msra.mxu1 %v1764_v20 }
 0x253   :  { %587 = vrot.lane.b32.xlu1 %v1641_v51, %s1515_s15 }
 0x254   :  { %v660_v21 = vpop.permute.xlu1 %659  ;;  %v782_v22 = vpop.permute.xlu0 %781 }
 0x255   :  { %v1769_v23 = vsel %vm783_vm12, %v780_v18, %v782_v22  ;;  %vm639_vm12 = vcmask 621568  }
 0x256   :  { %467 = vrot.lane.b32.xlu0 %v1644_v53, %s1516_s16 }
 0x257   :  { %465 = vrot.lane.b32.xlu1 %v1641_v51, %s1516_s16 }
 0x258   :  { %v535_v24 = vpop.permute.xlu1 %534  ;;  %v662_v25 = vpop.permute.xlu0 %661 }
 0x259   :  { %v1773_v26 = vsel %vm663_vm14, %v660_v21, %v662_v25  ;;  %vm751_vm14 = vcmask 359424  }
 0x25a   :  { %701 = vrot.lane.b32.xlu0 %v1644_v53, %s1517_s17  ;;  %1252 = vmatprep.subr.mxu1 %v1773_v26 }
 0x25b   :  { %699 = vrot.lane.b32.xlu1 %v1641_v51, %s1517_s17 }
 0x25c   :  { %v772_v27 = vpop.permute.xlu1 %771  ;;  %v537_v28 = vpop.permute.xlu0 %536 }
 0x25d   :  { %v1778_v29 = vsel %vm538_vm15, %v535_v24, %v537_v28  ;;  %vm631_vm15 = vcmask 629760  }
 0x25e   :  { %581 = vrot.lane.b32.xlu0 %v1644_v53, %s1518_s18  ;;  %1253 = vmatpush3.xpose.msra.mxu1 %v1778_v29 }
 0x25f   :  { %579 = vrot.lane.b32.xlu1 %v1641_v51, %s1518_s18 }
 0x260   :  { %v652_v30 = vpop.permute.xlu1 %651  ;;  %v774_v31 = vpop.permute.xlu0 %773 }
 0x261   :  { %v1783_v32 = vsel %vm775_vm4, %v772_v27, %v774_v31  ;;  %vm493_vm4 = vcmask 998400  }
 0x262   :  { %460 = vrot.lane.b32.xlu0 %v1644_v53, %s1473_s1 }
 0x263   :  { %458 = vrot.lane.b32.xlu1 %v1641_v51, %s1473_s1  ;;  %s1520_s1 = smov 93  }
 0x264   :  { %v527_v33 = vpop.permute.xlu1 %526  ;;  %v654_v34 = vpop.permute.xlu0 %653 }
 0x265   :  { %v1789_v35 = vsel %vm655_vm5, %v652_v30, %v654_v34  ;;  %vm607_vm5 = vcmask 654336  }
 0x266   :  { %693 = vrot.lane.b32.xlu0 %v1644_v53, %s1519_s19  ;;  %1254 = vmatprep.subr.mxu1 %v1789_v35 }
 0x267   :  { %691 = vrot.lane.b32.xlu1 %v1641_v51, %s1519_s19 }
 0x268   :  { %v764_v36 = vpop.permute.xlu1 %763  ;;  %v529_v37 = vpop.permute.xlu0 %528 }
 0x269   :  { %v1796_v39 = vsel %vm530_vm7, %v527_v33, %v529_v37  ;;  %vm485_vm7 = vcmask 1006592  }
 0x26a   :  { %573 = vrot.lane.b32.xlu0 %v1644_v53, %s1520_s1  ;;  %1255 = vmatpush3.xpose.msra.mxu1 %v1796_v39 }
 0x26b   :  { %571 = vrot.lane.b32.xlu1 %v1641_v51, %s1520_s1 }
 0x26c   :  { %v644_v41 = vpop.permute.xlu1 %643  ;;  %v766_v42 = vpop.permute.xlu0 %765 }
 0x26d   :  { %v1803_v44 = vsel %vm767_vm8, %v764_v36, %v766_v42  ;;  %vm599_vm8 = vcmask 736256  }
 0x26e   :  { %453 = vrot.lane.b32.xlu0 %v1644_v53, %s1472_s0 }
 0x26f   :  { %451 = vrot.lane.b32.xlu1 %v1641_v51, %s1472_s0  ;;  %s1522_s0 = smov [#allocation8]  }
 0x270   :  { %v519_v46 = vpop.permute.xlu1 %518  ;;  %v646_v47 = vpop.permute.xlu0 %645 }
 0x271   :  { %v1809_v49 = vsel %vm647_vm10, %v644_v41, %v646_v47  ;;  %vm477_vm10 = vcmask 1014784  }
 0x272   :  { %821 = vrot.lane.b32.xlu0 %v1644_v53, %s1521_s20  ;;  %1256 = vmatprep.subr.mxu1 %v1809_v49 }
 0x273   :  { %819 = vrot.lane.b32.xlu1 %v1641_v51, %s1521_s20 }
 0x274   :  { %v756_v52 = vpop.permute.xlu1 %755  ;;  %v521_v54 = vpop.permute.xlu0 %520 }
 0x275   :  { %v1814_v57 = vsel %vm522_vm11, %v519_v46, %v521_v54  ;;  %vm591_vm11 = vcmask 744448  }
 0x276   :  { %566 = vrot.lane.b32.xlu0 %v1644_v53, %s1480_s5  ;;  %1257 = vmatpush3.xpose.msra.mxu1 %v1814_v57 }
 0x277   :  { %564 = vrot.lane.b32.xlu1 %v1641_v51, %s1480_s5  ;;  %s1218_s5 = sshll.u32 %s1522_s0, 4  ;;  %s1219_s5 = int_to_ptr.vmem [resolvable:$true] %s1218_s5 }
 0x278   :  { %v636_v60 = vpop.permute.xlu1 %635  ;;  %v758_v61 = vpop.permute.xlu0 %757  ;;  %s1422_s21 = scalar_lea.vmem %s1219_s5, 256  ;;  %p1427_p11 = scmp.lt.s32.totalorder %s1219_s5, %s1219_s5 }
 0x279   :  { %v1821_v0 = vsel %vm759_vm9, %v756_v52, %v758_v61  ;;  %vm469_vm9 = vcmask 1022976   ;;  %p1423_p10 = scmp.ne.s32.totalorder %s1219_s5, %s1422_s21  ;;  %p1428_p12 = scmp.lt.s32.totalorder %s1422_s21, %s1422_s21 }
 0x27a   :  { %1374 = vrot.lane.b32.xlu0 %v1373_v63, %s1502_s6 }
 0x27b   :  { %1369 = vrot.lane.b32.xlu1 %v1368_v2, %s1502_s6  ;;  %p1429_p13 = por %p1428_p12, %p1427_p11 }
 0x27c   :  { %v512_v3 = vpop.permute.xlu1 %511  ;;  %v638_v53 = vpop.permute.xlu0 %637 }
 0x27d   :  { %v1825_v5 = vsel %vm639_vm12, %v636_v60, %v638_v53  ;;  %vm743_vm12 = vcmask 367616   ;;  %p1430_p0 = pnand %p1429_p13, %p1423_p10 }
 0x27e   :  { %1258 = vmatprep.subr.mxu1 %v1825_v5 }
 0x280   :  { %v748_v6 = vpop.permute.xlu1 %747  ;;  %v514_v8 = vpop.permute.xlu0 %513 }
 0x281   :  { %v1829_v10 = vsel %vm108_vm6, %v512_v3, %v514_v8  ;;  %vm623_vm6 = vcmask 637952  }
 0x282   :  { %1259 = vmatpush3.xpose.msra.mxu1 %v1829_v10 }
 0x284   :  { %v628_v12 = vpop.permute.xlu1 %627  ;;  %v750_v13 = vpop.permute.xlu0 %749 }
 0x285   :  { %v1832_v15 = vsel %vm751_vm14, %v748_v6, %v750_v13  ;;  %vm735_vm14 = vcmask 375808  }
 0x288   :  { %v505_v16 = vpop.permute.xlu1 %504  ;;  %v630_v18 = vpop.permute.xlu0 %629 }
 0x289   :  { %v1835_v19 = vsel %vm631_vm15, %v628_v12, %v630_v18 }
 0x28a   :  { %1260 = vmatprep.subr.mxu1 %v1835_v19 }
 0x28c   :  { %v1838_v21 = vpop.permute.xlu1 %739  ;;  %v507_v22 = vpop.permute.xlu0 %506 }
 0x28d   :  { %v1841_v24 = vsel %vm97_vm3, %v505_v16, %v507_v22  ;;  %vm615_vm3 = vcmask 646144  }
 0x28e   :  { %1261 = vmatpush3.xpose.msra.mxu1 %v1841_v24 }
 0x290   :  { %v620_v25 = vpop.permute.xlu1 %619  ;;  %v1844_v27 = vpop.permute.xlu0 %741 }
 0x294   :  { %v498_v28 = vpop.permute.xlu1 %497  ;;  %v622_v30 = vpop.permute.xlu0 %621 }
 0x295   :  { %v1846_v31 = vsel %vm623_vm6, %v620_v25, %v622_v30  ;;  %vm583_vm6 = vcmask 752640  }
 0x296   :  { %1262 = vmatprep.subr.mxu1 %v1846_v31 }
 0x298   :  { %v1849_v33 = vpop.permute.xlu1 %731  ;;  %v500_v34 = vpop.permute.xlu0 %499 }
 0x299   :  { %v1852_v36 = vsel %vm86_vm2, %v498_v28, %v500_v34  ;;  %vm815_vm2 = vcmask 220160  }
 0x29a   :  { %1263 = vmatpush3.xpose.msra.mxu1 %v1852_v36 }
 0x29c   :  { %v612_v37 = vpop.permute.xlu1 %611  ;;  %v1855_v38 = vpop.permute.xlu0 %733 }
 0x2a0   :  { %v490_v40 = vpop.permute.xlu1 %489  ;;  %v614_v41 = vpop.permute.xlu0 %613 }
 0x2a1   :  { %v1857_v42 = vsel %vm615_vm3, %v612_v37, %v614_v41  ;;  %v1910_v41 = vsel %vm743_vm12, %v1838_v21, %v1844_v27  ;;  %vm727_vm3 = vcmask 384000  }
 0x2a2   :  { %1264 = vmatprep.subr.mxu1 %v1857_v42 }
 0x2a4   :  { %v1860_v43 = vpop.permute.xlu1 %723  ;;  %v492_v45 = vpop.permute.xlu0 %491 }
 0x2a5   :  { %v1862_v46 = vsel %vm493_vm4, %v490_v40, %v492_v45  ;;  %vm719_vm4 = vcmask 392192  }
 0x2a6   :  { %1265 = vmatpush3.xpose.msra.mxu1 %v1862_v46 }
 0x2a8   :  { %v1865_v47 = vpop.permute.xlu0 %725 }
 0x2a9   :  { %v814_v48 = vpop.permute.xlu1 %813 }
 0x2aa   :  { %v1868_v50 = vsel %vm815_vm2, %v1720_v56, %v814_v48  ;;  %vm711_vm2 = vcmask 474112  }
 0x2ab   :  { %988 = vmatpush1.xpose.msra.mxu0 %v1868_v50 }
 0x2ac   :  { %v606_v52 = vpop.permute.xlu0 %605  ;;  %989 = vmatprep.subr.mxu0 %v1479_v9 }
 0x2ad   :  { %v604_v54 = vpop.permute.xlu1 %603 }
 0x2ae   :  { %v1872_v55 = vsel %vm607_vm5, %v604_v54, %v606_v52  ;;  %v1916_v52 = vsel %vm735_vm14, %v1849_v33, %v1855_v38  ;;  %vm575_vm5 = vcmask 760832  }
 0x2af   :  { %1266 = vmatprep.subr.mxu1 %v1872_v55  ;;  %990 = vmatpush1.xpose.msra.mxu0 %v1724_v59 }
 0x2b0   :  { %v484_v58 = vpop.permute.xlu0 %483  ;;  %991 = vmatprep.subr.mxu0 %v1479_v9 }
 0x2b1   :  { %v482_v60 = vpop.permute.xlu1 %481 }
 0x2b2   :  { %v1877_v56 = vsel %vm485_vm7, %v482_v60, %v484_v58  ;;  %v1925_v58 = vsel %vm727_vm3, %v1860_v43, %v1865_v47  ;;  %vm695_vm7 = vcmask 490496  }
 0x2b3   :  { %1267 = vmatpush3.xpose.msra.mxu1 %v1877_v56  ;;  %992 = vmatpush1.xpose.msra.mxu0 %v1740_v4 }
 0x2b4   :  { %v1881_v61 = vpop.permute.xlu0 %717  ;;  %993 = vmatprep.subr.mxu0 %v1479_v9 }
 0x2b5   :  { %v716_v63 = vpop.permute.xlu1 %715 }
 0x2b7   :  { %994 = vmatpush1.xpose.msra.mxu0 %v1755_v14 }
 0x2b8   :  { %v598_v2 = vpop.permute.xlu0 %597  ;;  %995 = vmatprep.subr.mxu0 %v1479_v9 }
 0x2b9   :  { %v596_v3 = vpop.permute.xlu1 %595 }
 0x2ba   :  { %v1886_v53 = vsel %vm599_vm8, %v596_v3, %v598_v2  ;;  %v1934_v2 = vsel %vm719_vm4, %v716_v63, %v1881_v61  ;;  %vm823_vm8 = vcmask 211968  }
 0x2bb   :  { %1268 = vmatprep.subr.mxu1 %v1886_v53  ;;  %996 = vmatpush1.xpose.msra.mxu0 %v1769_v23 }
 0x2bc   :  { %v476_v6 = vpop.permute.xlu0 %475  ;;  %997 = vmatprep.subr.mxu0 %v1479_v9 }
 0x2bd   :  { %v474_v8 = vpop.permute.xlu1 %473 }
 0x2be   :  { %v1891_v12 = vsel %vm477_vm10, %v474_v8, %v476_v6 }
 0x2bf   :  { %1269 = vmatpush3.xpose.msra.mxu1 %v1891_v12  ;;  %998 = vmatpush1.xpose.msra.mxu0 %v1783_v32 }
 0x2c0   :  { %v710_v13 = vpop.permute.xlu0 %709  ;;  %999 = vmatprep.subr.mxu0 %v1479_v9 }
 0x2c1   :  { %v708_v16 = vpop.permute.xlu1 %707 }
 0x2c2   :  { %v1938_v3 = vsel %vm711_vm2, %v708_v16, %v710_v13 }
 0x2c3   :  { %1000 = vmatpush1.xpose.msra.mxu0 %v1803_v44 }
 0x2c4   :  { %v590_v18 = vpop.permute.xlu0 %589  ;;  %1001 = vmatprep.subr.mxu0 %v1479_v9 }
 0x2c5   :  { %v588_v22 = vpop.permute.xlu1 %587 }
 0x2c6   :  { %v1898_v25 = vsel %vm591_vm11, %v588_v22, %v590_v18 }
 0x2c7   :  { %1270 = vmatprep.subr.mxu1 %v1898_v25  ;;  %1002 = vmatpush1.xpose.msra.mxu0 %v1821_v0 }
 0x2c8   :  { %v468_v28 = vpop.permute.xlu0 %467  ;;  %1003 = vmatprep.subr.mxu0 %v1479_v9 }
 0x2c9   :  { %v466_v30 = vpop.permute.xlu1 %465 }
 0x2ca   :  { %v1903_v34 = vsel %vm469_vm9, %v466_v30, %v468_v28 }
 0x2cb   :  { %1271 = vmatpush3.xpose.msra.mxu1 %v1903_v34  ;;  %1004 = vmatpush1.xpose.msra.mxu0 %v1832_v15 }
 0x2cc   :  { %v702_v37 = vpop.permute.xlu0 %701  ;;  %1005 = vmatprep.subr.mxu0 %v1479_v9 }
 0x2cd   :  { %v700_v40 = vpop.permute.xlu1 %699 }
 0x2cf   :  { %1006 = vmatpush1.xpose.msra.mxu0 %v1910_v41 }
 0x2d0   :  { %v582_v45 = vpop.permute.xlu0 %581  ;;  %1007 = vmatprep.subr.mxu0 %v1479_v9 }
 0x2d1   :  { %v580_v48 = vpop.permute.xlu1 %579 }
 0x2d2   :  { %v1918_v54 = vsel %vm583_vm6, %v580_v48, %v582_v45 }
 0x2d3   :  { %1272 = vmatprep.subr.mxu1 %v1918_v54  ;;  %1008 = vmatpush1.xpose.msra.mxu0 %v1916_v52 }
 0x2d4   :  { %v461_v21 = vpop.permute.xlu0 %460  ;;  %1009 = vmatprep.subr.mxu0 %v1479_v9 }
 0x2d5   :  { %v459_v27 = vpop.permute.xlu1 %458 }
 0x2d6   :  { %v1928_v60 = vsel %vm75_vm0, %v459_v27, %v461_v21  ;;  %vm703_vm0 = vcmask 482304  }
 0x2d7   :  { %1273 = vmatpush3.xpose.msra.mxu1 %v1928_v60  ;;  %1010 = vmatpush1.xpose.msra.mxu0 %v1925_v58  ;;  %v1945_v63 = vsel %vm703_vm0, %v700_v40, %v702_v37 }
 0x2d8   :  { %v694_v33 = vpop.permute.xlu0 %693  ;;  %1011 = vmatprep.subr.mxu0 %v1479_v9 }
 0x2d9   :  { %v692_v38 = vpop.permute.xlu1 %691 }
 0x2da   :  { %v1953_v22 = vsel %vm695_vm7, %v692_v38, %v694_v33 }
 0x2db   :  { %1012 = vmatpush1.xpose.msra.mxu0 %v1934_v2 }
 0x2dc   :  { %v574_v43 = vpop.permute.xlu0 %573  ;;  %1013 = vmatprep.subr.mxu0 %v1479_v9 }
 0x2dd   :  { %v572_v47 = vpop.permute.xlu1 %571 }
 0x2de   :  { %v1940_v6 = vsel %vm575_vm5, %v572_v47, %v574_v43 }
 0x2df   :  { %1274 = vmatprep.subr.mxu1 %v1940_v6  ;;  %1014 = vmatpush1.xpose.msra.mxu0 %v1938_v3 }
 0x2e0   :  { %v454_v8 = vpop.permute.xlu0 %453  ;;  %1015 = vmatprep.subr.mxu0 %v1479_v9 }
 0x2e1   :  { %v452_v61 = vpop.permute.xlu1 %451 }
 0x2e2   :  { %v1948_v18 = vsel %vm64_vm1, %v452_v61, %v454_v8 }
 0x2e3   :  { %1275 = vmatpush3.xpose.msra.mxu1 %v1948_v18  ;;  %1016 = vmatpush1.xpose.msra.mxu0 %v1945_v63 }
 0x2e4   :  { %v822_v13 = vpop.permute.xlu0 %821  ;;  %1017 = vmatprep.subr.mxu0 %v1479_v9 }
 0x2e5   :  { %v820_v16 = vpop.permute.xlu1 %819 }
 0x2e6   :  { %v1957_v37 = vsel %vm823_vm8, %v820_v16, %v822_v13 }
 0x2e7   :  { %1018 = vmatpush1.xpose.msra.mxu0 %v1953_v22 }
 0x2e8   :  { %v567_v28 = vpop.permute.xlu0 %566  ;;  %1049 = vmatprep.subr.mxu0 %v1479_v9 }
 0x2e9   :  { %v565_v30 = vpop.permute.xlu1 %564 }
 0x2ea   :  { %v1960_v40 = vsel %vm141_vm13, %v565_v30, %v567_v28 }
 0x2eb   :  { %1276 = vmatprep.subr.mxu1 %v1960_v40  ;;  %1050 = vmatpush2.xpose.msra.mxu0 %v1957_v37 }
 0x2ec   :  { %1277 = vmatpush3.xpose.msra.mxu1 %v1641_v51  ;;  %v1375_v45 = vpop.permute.xlu0 %1374  ;;  %1137 = vmatprep.subr.mxu0 %v1479_v9 }
 0x2ed   :  { %1280 = vmatprep.subr.mxu1 %v1728_v62  ;;  %v1370_v48 = vpop.permute.xlu1 %1369  ;;  %v1377_v21 = vunpack.i.h.bf16 %v1375_v45  ;;  %v1376_v27 = vunpack.i.l.bf16 %v1375_v45 }
 0x2ee   :  { %v1372_v33 = vunpack.i.h.bf16 %v1370_v48  ;;  %v1371_v38 = vunpack.i.l.bf16 %v1370_v48 }
 0x2ef   :  { %v1970_v47 = vsel %vm631_vm15, %v1376_v27, %v1377_v21 }
 0x2f0   :  { %v914_v43 = vsel %vm631_vm15, %v1371_v38, %v1372_v33 }
 0x2f1   :  { %1278 = vmatprep.mubr.f32.mxu1 %v914_v43  ;;  %1052 = vmatmul.mubr.f32.vlgmr.msra.gmra.mxu0 %v914_v43 }
 0x2f2   :  { %1138 = vmatpush1.xpose.msra.mxu0 %v1868_v50  ;;  %1279 = vmatmul.mubr.f32.vlgmr.msra.gmra.mxu1 %v914_v43 }
 0x2f3   :  { %1281 = vmatpush3.xpose.msra.mxu1 %v1735_v1  ;;  %1312 = vmatprep.mubr.f32.mxu1 %v1970_v47 }
 0x2f4   :  { %1282 = vmatprep.subr.mxu1 %v1744_v7  ;;  %1139 = vmatprep.subr.mxu0 %v1479_v9 }
 0x2f5   :  { %1201 = vmatprep.mubr.f32.mxu0 %v1479_v9 }
 0x2f6   :  { %1140 = vmatpush1.xpose.msra.mxu0 %v1724_v59 }
 0x2f7   :  { %1283 = vmatpush3.xpose.msra.mxu1 %v1750_v11  ;;  %1141 = vmatprep.subr.mxu0 %v1479_v9 }
 0x2f8   :  { %1284 = vmatprep.subr.mxu1 %v1759_v17 }
 0x2fa   :  { %1142 = vmatpush1.xpose.msra.mxu0 %v1740_v4 }
 0x2fb   :  { %1285 = vmatpush3.xpose.msra.mxu1 %v1764_v20  ;;  %1143 = vmatprep.subr.mxu0 %v1479_v9 }
 0x2fc   :  { %1286 = vmatprep.subr.mxu1 %v1773_v26 }
 0x2fe   :  { %1144 = vmatpush1.xpose.msra.mxu0 %v1755_v14 }
 0x2ff   :  { %1287 = vmatpush3.xpose.msra.mxu1 %v1778_v29  ;;  %1145 = vmatprep.subr.mxu0 %v1479_v9 }
 0x300   :  { %1288 = vmatprep.subr.mxu1 %v1789_v35 }
 0x302   :  { %1146 = vmatpush1.xpose.msra.mxu0 %v1769_v23 }
 0x303   :  { %1289 = vmatpush3.xpose.msra.mxu1 %v1796_v39  ;;  %1147 = vmatprep.subr.mxu0 %v1479_v9 }
 0x304   :  { %1290 = vmatprep.subr.mxu1 %v1809_v49 }
 0x306   :  { %1148 = vmatpush1.xpose.msra.mxu0 %v1783_v32 }
 0x307   :  { %1291 = vmatpush3.xpose.msra.mxu1 %v1814_v57  ;;  %1149 = vmatprep.subr.mxu0 %v1479_v9 }
 0x308   :  { %1292 = vmatprep.subr.mxu1 %v1825_v5 }
 0x30a   :  { %1150 = vmatpush1.xpose.msra.mxu0 %v1803_v44 }
 0x30b   :  { %1293 = vmatpush3.xpose.msra.mxu1 %v1829_v10  ;;  %1151 = vmatprep.subr.mxu0 %v1479_v9 }
 0x30c   :  { %1294 = vmatprep.subr.mxu1 %v1835_v19 }
 0x30e   :  { %1152 = vmatpush1.xpose.msra.mxu0 %v1821_v0 }
 0x30f   :  { %1295 = vmatpush3.xpose.msra.mxu1 %v1841_v24  ;;  %1153 = vmatprep.subr.mxu0 %v1479_v9 }
 0x310   :  { %1296 = vmatprep.subr.mxu1 %v1846_v31 }
 0x312   :  { %1154 = vmatpush1.xpose.msra.mxu0 %v1832_v15 }
 0x313   :  { %1297 = vmatpush3.xpose.msra.mxu1 %v1852_v36  ;;  %1155 = vmatprep.subr.mxu0 %v1479_v9 }
 0x314   :  { %1298 = vmatprep.subr.mxu1 %v1857_v42 }
 0x316   :  { %1156 = vmatpush1.xpose.msra.mxu0 %v1910_v41 }
 0x317   :  { %1299 = vmatpush3.xpose.msra.mxu1 %v1862_v46  ;;  %1157 = vmatprep.subr.mxu0 %v1479_v9 }
 0x318   :  { %1300 = vmatprep.subr.mxu1 %v1872_v55 }
 0x31a   :  { %1158 = vmatpush1.xpose.msra.mxu0 %v1916_v52 }
 0x31b   :  { %1301 = vmatpush3.xpose.msra.mxu1 %v1877_v56  ;;  %1159 = vmatprep.subr.mxu0 %v1479_v9 }
 0x31c   :  { %1302 = vmatprep.subr.mxu1 %v1886_v53 }
 0x31e   :  { %1160 = vmatpush1.xpose.msra.mxu0 %v1925_v58 }
 0x31f   :  { %1303 = vmatpush3.xpose.msra.mxu1 %v1891_v12  ;;  %1161 = vmatprep.subr.mxu0 %v1479_v9 }
 0x320   :  { %1304 = vmatprep.subr.mxu1 %v1898_v25 }
 0x322   :  { %1162 = vmatpush1.xpose.msra.mxu0 %v1934_v2 }
 0x323   :  { %1305 = vmatpush3.xpose.msra.mxu1 %v1903_v34  ;;  %1163 = vmatprep.subr.mxu0 %v1479_v9 }
 0x324   :  { %1306 = vmatprep.subr.mxu1 %v1918_v54 }
 0x326   :  { %1164 = vmatpush1.xpose.msra.mxu0 %v1938_v3 }
 0x327   :  { %1307 = vmatpush3.xpose.msra.mxu1 %v1928_v60  ;;  %1165 = vmatprep.subr.mxu0 %v1479_v9 }
 0x328   :  { %1308 = vmatprep.subr.mxu1 %v1940_v6 }
 0x32a   :  { %1166 = vmatpush1.xpose.msra.mxu0 %v1945_v63 }
 0x32b   :  { %1309 = vmatpush3.xpose.msra.mxu1 %v1948_v18  ;;  %1167 = vmatprep.subr.mxu0 %v1479_v9 }
 0x32c   :  { %1310 = vmatprep.subr.mxu1 %v1960_v40 }
 0x32e   :  { %1168 = vmatpush1.xpose.msra.mxu0 %v1953_v22 }
 0x32f   :  { %1311 = vmatpush3.xpose.msra.mxu1 %v1641_v51  ;;  %1199 = vmatprep.subr.mxu0 %v1479_v9 }
 0x332   :  { %1313 = vmatmul.mubr.f32.vlgmr.msra.gmra.mxu1 %v1970_v47  ;;  %1200 = vmatpush2.xpose.msra.mxu0 %v1957_v37 }
 0x335   :  { %1202 = vmatmul.mubr.f32.vlgmr.msra.gmra.mxu0 %v1970_v47 }
 0x336   :  { %1433 = shalt.err (!%p1430_p0)
}
 0x337   :  { %1221 = dma.vmem_to_hbm [thread:$0]  %s1219_s5, 256, %s2048_s3, [#allocation5]  }
 0x338   :  { %s1523_s24 = smov [#allocation9]  }
 0x339   :  { %s1228_s25 = sshll.u32 %s1523_s24, 4  ;;  %s1229_s25 = int_to_ptr.vmem [resolvable:$true] %s1228_s25 }
 0x33a   :  { %s1442_s3 = scalar_lea.vmem %s1229_s25, 512  ;;  %p1447_p2 = scmp.lt.s32.totalorder %s1229_s25, %s1229_s25 }
 0x33b   :  { %p1443_p1 = scmp.ne.s32.totalorder %s1229_s25, %s1442_s3  ;;  %p1448_p3 = scmp.lt.s32.totalorder %s1442_s3, %s1442_s3 }
 0x33d   :  { %p1449_p4 = por %p1448_p3, %p1447_p2 }
 0x33f   :  { %p1450_p5 = pnand %p1449_p4, %p1443_p1 }
 0x3b1   :  { %v1053_v51 = vpop.f32.mrf.mxu0 }
 0x3b2   :  { %v982_v9 = vpop.f32.mrf.mxu1 }
 0x3b3   :  { %v1055_v1 = vpop.f32.mrf.mxu0 }
 0x3b4   :  { %v984_v59 = vpop.f32.mrf.mxu1 }
 0x3f2   :  { %v1132_v62 = vpop.f32.mrf.mxu1 }
 0x3f3   :  { %v1133_v4 = vadd.f32 %v1132_v62, %v982_v9 }
 0x3f4   :  { %v1134_v7 = vpop.f32.mrf.mxu1 }
 0x3f5   :  { %1208 = vst [vmem:[#allocation9] sm:$0xff] %v1133_v4  ;;  %v1135_v11 = vadd.f32 %v1134_v7, %v984_v59  ;;  %v1203_v14 = vpop.f32.mrf.mxu0 }
 0x3f6   :  { %v1204_v17 = vadd.f32 %v1203_v14, %v1053_v51 }
 0x3f7   :  { %1209 = vst [vmem:[#allocation9 + $0x8] sm:$0xff] %v1135_v11  ;;  %v1205_v20 = vpop.f32.mrf.mxu0 }
 0x3f8   :  { %1210 = vst [vmem:[#allocation9 + $0x10] sm:$0xff] %v1204_v17  ;;  %v1206_v23 = vadd.f32 %v1205_v20, %v1055_v1 }
 0x3fa   :  { %1211 = vst [vmem:[#allocation9 + $0x18] sm:$0xff] %v1206_v23 }
 0x3fb   :  { %1453 = shalt.err (!%p1450_p5)
}
 0x3fc   :  { %1231 = dma.vmem_to_hbm [thread:$0]  %s1229_s25, 512, %s2049_s4, [#allocation10]  }
 0x3fd   :  { %1466 = dma.done.wait [#allocation5], 256  }
 0x3fe   :  { %1467 = vsyncadd [#allocation5], 4294967040 }
 0x3ff   :  { %1468 = dma.done.wait [#allocation10], 512  }
 0x400   :  { %1469 = vsyncadd [#allocation10], 4294966784 }
 0x401   :  { %1238 = vsyncpa [#allocation4], 1 }
 0x402   :  { %1239 = vsyncpa [#allocation7], 1 }
 0x403   :  { %1240 = vsyncpa [#allocation5], 1 }
 0x404   :  { %1241 = vsyncpa [#allocation10], 1 }

</bundles_post_ra>
